<compile_context>
chip_gen: v7x
topology: tpu7x:2x2x1
jax: 0.10.0
libtpu: 0.0.40
codegen_flags: <defaults>
</compile_context>

<pallas_src>
import jax
import jax.numpy as jnp
from jax.experimental import pallas as pl
from jax.experimental.pallas import tpu as pltpu


# ----------------------------- Pallas kernel --------------------------------

def _conv3x3_bf16(a, w_ref, b_ref):
    """3x3 / stride-1 / pad-1 conv of one (H, W, C) plane via im2col.

    a     : (H, W, C) float32 activation (already relu'd by the caller).
    w_ref : (9*C, Cout) bf16 VMEM ref -- HWIO weights flattened in (dh, dw, cin)
            order, BN scale already folded in.
    b_ref : (1, Cout) f32 VMEM ref -- conv bias with BN shift folded in.
    Returns an (H, W, Cout) float32 result (f32 MXU accumulation).
    """
    H, W, C = a.shape
    ab = a.astype(jnp.bfloat16)

    # Zero-pad by 1: H pad is a leading-dim concat (cheap), W pad is one
    # sublane-dim concat.  Built functionally -- no scratch re-zeroing.
    zrow = jnp.zeros((1, W, C), jnp.bfloat16)
    ap = jnp.concatenate([zrow, ab, zrow], axis=0)            # (H+2, W, C)
    zcol = jnp.zeros((H + 2, 1, C), jnp.bfloat16)
    ap = jnp.concatenate([zcol, ap, zcol], axis=1)            # (H+2, W+2, C)

    # Three width-shifted copies (the only sublane-offset slices), reused for
    # all three height taps (leading-dim slices are layout-aligned => cheap).
    cols = [ap[:, dw:dw + W, :] for dw in range(3)]           # (H+2, W, C) each
    taps = [cols[dw][dh:dh + H].reshape(H * W, C)
            for dh in range(3) for dw in range(3)]
    patches = jnp.concatenate(taps, axis=1)                   # (H*W, 9C) bf16

    acc = jnp.dot(patches, w_ref[...],
                  preferred_element_type=jnp.float32)         # MXU, K = 9*C
    return (acc + b_ref[...]).reshape(H, W, -1)               # f32


def rcu_bn_kernel(x_ref, w1_ref, b1_ref, w2_ref, b2_ref, o_ref):
    """out = bnconv2(relu(bnconv1(relu(x)))) + x for one NHWC batch element.
    (BN is folded into the conv weights/biases by the wrapper.)"""
    x = x_ref[0]                                   # (H, W, C) f32
    a = jnp.maximum(x, 0.0)
    h1 = _conv3x3_bf16(a, w1_ref, b1_ref)          # conv1 + BN (folded)
    a2 = jnp.maximum(h1, 0.0)
    h2 = _conv3x3_bf16(a2, w2_ref, b2_ref)         # conv2 + BN (folded)
    o_ref[0] = (h2 + x).astype(o_ref.dtype)        # residual add in f32


# ------------------------------- JAX glue ------------------------------------

def residual_conv_unit_bn_nhwc(x_nhwc, params, eps=1e-5):
    """ResidualConvUnitBN.forward, NHWC in / NHWC out (channels-last core)."""
    N, H, W, C = x_nhwc.shape

    # Fold the shared, inference-mode BatchNorm into both convs:
    #   bn(y) = s*y + t,  s = gamma / sqrt(var + eps),  t = beta - s*mean
    s = params["gamma"] * jax.lax.rsqrt(params["var"] + eps)
    t = params["beta"] - params["mean"] * s

    def fold(w, b):
        wf = (w * s).reshape(9 * C, C).astype(jnp.bfloat16)   # (dh,dw,cin) x cout
        bf = (b * s + t).reshape(1, C).astype(jnp.float32)
        return wf, bf

    w1, b1 = fold(params["w1"], params["b1"])
    w2, b2 = fold(params["w2"], params["b2"])
    x = x_nhwc.astype(jnp.float32)

    # Explicit scoped-VMEM budget (default 16/32 MiB can force spills on bigger
    # shapes); clamped to 64 MiB so it is also safe on v7x.
    blk = H * W * C * 4
    per_step = 6 * blk + 4 * H * W * 9 * C * 2 + 2 * (9 * C * C * 2 + 4 * C)
    vmem_limit = int(min(64 * 2**20, max(32 * 2**20, 4 * per_step)))

    img_spec = pl.BlockSpec((1, H, W, C), lambda n: (n, 0, 0, 0))
    w_spec = pl.BlockSpec((9 * C, C), lambda n: (0, 0))
    b_spec = pl.BlockSpec((1, C), lambda n: (0, 0))

    return pl.pallas_call(
        rcu_bn_kernel,
        out_shape=jax.ShapeDtypeStruct((N, H, W, C), jnp.float32),
        grid=(N,),
        in_specs=[img_spec, w_spec, b_spec, w_spec, b_spec],
        out_specs=img_spec,
        compiler_params=pltpu.CompilerParams(
            dimension_semantics=("parallel",),   # batch elems independent -> v7x 2 TC
            vmem_limit_bytes=vmem_limit),
    )(x, w1, b1, w2, b2)


def residual_conv_unit_bn(x_nchw, params, eps=1e-5):
    """PyTorch-style NCHW boundary.  (If the surrounding model can stay
    channels-last, call residual_conv_unit_bn_nhwc directly and skip both
    transposes.)"""
    x = jnp.transpose(x_nchw, (0, 2, 3, 1))
    out = residual_conv_unit_bn_nhwc(x, params, eps)
    return jnp.transpose(out, (0, 3, 1, 2))


def init_params(key, features):
    """Deterministic synthetic parameters (PyTorch conv default-init style).
    Conv weights are HWIO; the PyTorch OIHW equivalent is w.transpose(3,2,0,1).
    BN params are eval-mode running statistics + affine params."""
    ks = jax.random.split(key, 8)
    bound = 1.0 / (features * 9) ** 0.5

    def w(k):
        return jax.random.uniform(k, (3, 3, features, features),
                                  jnp.float32, -bound, bound)

    def b(k):
        return jax.random.uniform(k, (features,), jnp.float32, -bound, bound)

    return dict(
        w1=w(ks[0]), b1=b(ks[1]), w2=w(ks[2]), b2=b(ks[3]),
        gamma=jax.random.uniform(ks[4], (features,), jnp.float32, 0.5, 1.5),
        beta=jax.random.uniform(ks[5], (features,), jnp.float32, -0.5, 0.5),
        mean=0.1 * jax.random.normal(ks[6], (features,), jnp.float32),
        var=jax.random.uniform(ks[7], (features,), jnp.float32, 0.5, 1.5),
    )


# --------------------------- pure-JAX reference ------------------------------

def _conv_ref(x, w, b):
    return jax.lax.conv_general_dilated(
        x, w, (1, 1), ((1, 1), (1, 1)),
        dimension_numbers=("NHWC", "HWIO", "NHWC")) + b


def rcu_bn_reference(x_nchw, params, eps=1e-5):
    x = jnp.transpose(x_nchw, (0, 2, 3, 1)).astype(jnp.float32)

    def bn(y):
        return (params["gamma"] * (y - params["mean"])
                * jax.lax.rsqrt(params["var"] + eps) + params["beta"])

    out = jax.nn.relu(x)
    out = _conv_ref(out, params["w1"], params["b1"])
    out = jax.nn.relu(bn(out))
    out = bn(_conv_ref(out, params["w2"], params["b2"]))
    out = out + x
    return jnp.transpose(out, (0, 3, 1, 2))


# ---------------------------------- main --------------------------------------

if __name__ == "__main__":
    key = jax.random.PRNGKey(0)
    kx, kp = jax.random.split(key)
    N, C, H, W = 2, 4, 16, 16
    x = jax.random.normal(kx, (N, C, H, W), jnp.float32)
    params = init_params(kp, C)

    out = residual_conv_unit_bn(x, params)
    out = jax.block_until_ready(out)

    ref = rcu_bn_reference(x, params)
    assert out.shape == (N, C, H, W), out.shape
    # bf16 matmul operands (f32 accumulation): allow bf16-level tolerance.
    if not jnp.allclose(out, ref, atol=2e-2, rtol=2e-2):
        err = float(jnp.max(jnp.abs(out - ref)))
        raise AssertionError(f"Pallas result mismatches reference, max|err|={err}")
    print("KERNEL_OK")
</pallas_src>

<mosaic_0001>
module attributes {stable_mosaic.version = 11 : i64} {
  func.func @rcu_bn_kernel(%arg0: i32, %arg1: memref<1x16x16x4xf32, #tpu.memory_space<vmem>>, %arg2: memref<36x4xbf16, #tpu.memory_space<vmem>>, %arg3: memref<1x4xf32, #tpu.memory_space<vmem>>, %arg4: memref<36x4xbf16, #tpu.memory_space<vmem>>, %arg5: memref<1x4xf32, #tpu.memory_space<vmem>>, %arg6: memref<1x16x16x4xf32, #tpu.memory_space<vmem>>) attributes {dimension_semantics = [#tpu.dimension_semantics<parallel>], iteration_bounds = array<i64: 2>, scalar_prefetch = 0 : i64, scratch_operands = 0 : i64, tpu.core_type = #tpu.core_type<tc>, window_params = [{transform_indices = @transform_0, window_bounds = array<i64: 1, 16, 16, 4>}, {pipeline_mode = #tpu.pipeline_mode<synchronous>, transform_indices = @transform_1, window_bounds = array<i64: 36, 4>}, {pipeline_mode = #tpu.pipeline_mode<synchronous>, transform_indices = @transform_2, window_bounds = array<i64: 1, 4>}, {pipeline_mode = #tpu.pipeline_mode<synchronous>, transform_indices = @transform_3, window_bounds = array<i64: 36, 4>}, {pipeline_mode = #tpu.pipeline_mode<synchronous>, transform_indices = @transform_4, window_bounds = array<i64: 1, 4>}, {transform_indices = @transform_5, window_bounds = array<i64: 1, 16, 16, 4>}]} {
    %c0 = arith.constant 0 : index
    %c0_0 = arith.constant 0 : index
    %c0_1 = arith.constant 0 : index
    %c0_2 = arith.constant 0 : index
    %0 = vector.load %arg1[%c0, %c0_0, %c0_1, %c0_2] : memref<1x16x16x4xf32, #tpu.memory_space<vmem>>, vector<1x16x16x4xf32>
    %1 = vector.shape_cast %0 : vector<1x16x16x4xf32> to vector<16x16x4xf32>
    %cst = arith.constant 0.000000e+00 : f32
    %2 = vector.broadcast %cst : f32 to vector<16x16x4xf32>
    %3 = arith.maximumf %1, %2 : vector<16x16x4xf32>
    %4 = arith.truncf %3 : vector<16x16x4xf32> to vector<16x16x4xbf16>
    %cst_3 = arith.constant 0.000000e+00 : bf16
    %5 = vector.broadcast %cst_3 : bf16 to vector<1x16x4xbf16>
    %6 = tpu.concatenate %5, %4, %5 in 0 : vector<1x16x4xbf16>, vector<16x16x4xbf16>, vector<1x16x4xbf16> -> vector<18x16x4xbf16>
    %cst_4 = arith.constant 0.000000e+00 : bf16
    %7 = vector.broadcast %cst_4 : bf16 to vector<18x1x4xbf16>
    %8 = tpu.concatenate %7, %6, %7 in 1 : vector<18x1x4xbf16>, vector<18x16x4xbf16>, vector<18x1x4xbf16> -> vector<18x18x4xbf16>
    %9 = vector.extract_strided_slice %8 {offsets = [0, 0, 0], sizes = [18, 16, 4], strides = [1, 1, 1]} : vector<18x18x4xbf16> to vector<18x16x4xbf16>
    %10 = vector.extract_strided_slice %8 {offsets = [0, 1, 0], sizes = [18, 16, 4], strides = [1, 1, 1]} : vector<18x18x4xbf16> to vector<18x16x4xbf16>
    %11 = vector.extract_strided_slice %8 {offsets = [0, 2, 0], sizes = [18, 16, 4], strides = [1, 1, 1]} : vector<18x18x4xbf16> to vector<18x16x4xbf16>
    %12 = vector.extract_strided_slice %9 {offsets = [0, 0, 0], sizes = [16, 16, 4], strides = [1, 1, 1]} : vector<18x16x4xbf16> to vector<16x16x4xbf16>
    %13 = vector.shape_cast %12 : vector<16x16x4xbf16> to vector<256x4xbf16>
    %14 = vector.extract_strided_slice %10 {offsets = [0, 0, 0], sizes = [16, 16, 4], strides = [1, 1, 1]} : vector<18x16x4xbf16> to vector<16x16x4xbf16>
    %15 = vector.shape_cast %14 : vector<16x16x4xbf16> to vector<256x4xbf16>
    %16 = vector.extract_strided_slice %11 {offsets = [0, 0, 0], sizes = [16, 16, 4], strides = [1, 1, 1]} : vector<18x16x4xbf16> to vector<16x16x4xbf16>
    %17 = vector.shape_cast %16 : vector<16x16x4xbf16> to vector<256x4xbf16>
    %18 = vector.extract_strided_slice %9 {offsets = [1, 0, 0], sizes = [16, 16, 4], strides = [1, 1, 1]} : vector<18x16x4xbf16> to vector<16x16x4xbf16>
    %19 = vector.shape_cast %18 : vector<16x16x4xbf16> to vector<256x4xbf16>
    %20 = vector.extract_strided_slice %10 {offsets = [1, 0, 0], sizes = [16, 16, 4], strides = [1, 1, 1]} : vector<18x16x4xbf16> to vector<16x16x4xbf16>
    %21 = vector.shape_cast %20 : vector<16x16x4xbf16> to vector<256x4xbf16>
    %22 = vector.extract_strided_slice %11 {offsets = [1, 0, 0], sizes = [16, 16, 4], strides = [1, 1, 1]} : vector<18x16x4xbf16> to vector<16x16x4xbf16>
    %23 = vector.shape_cast %22 : vector<16x16x4xbf16> to vector<256x4xbf16>
    %24 = vector.extract_strided_slice %9 {offsets = [2, 0, 0], sizes = [16, 16, 4], strides = [1, 1, 1]} : vector<18x16x4xbf16> to vector<16x16x4xbf16>
    %25 = vector.shape_cast %24 : vector<16x16x4xbf16> to vector<256x4xbf16>
    %26 = vector.extract_strided_slice %10 {offsets = [2, 0, 0], sizes = [16, 16, 4], strides = [1, 1, 1]} : vector<18x16x4xbf16> to vector<16x16x4xbf16>
    %27 = vector.shape_cast %26 : vector<16x16x4xbf16> to vector<256x4xbf16>
    %28 = vector.extract_strided_slice %11 {offsets = [2, 0, 0], sizes = [16, 16, 4], strides = [1, 1, 1]} : vector<18x16x4xbf16> to vector<16x16x4xbf16>
    %29 = vector.shape_cast %28 : vector<16x16x4xbf16> to vector<256x4xbf16>
    %30 = tpu.concatenate %13, %15, %17, %19, %21, %23, %25, %27, %29 in 1 : vector<256x4xbf16>, vector<256x4xbf16>, vector<256x4xbf16>, vector<256x4xbf16>, vector<256x4xbf16>, vector<256x4xbf16>, vector<256x4xbf16>, vector<256x4xbf16>, vector<256x4xbf16> -> vector<256x36xbf16>
    %c0_5 = arith.constant 0 : index
    %c0_6 = arith.constant 0 : index
    %31 = vector.load %arg2[%c0_5, %c0_6] : memref<36x4xbf16, #tpu.memory_space<vmem>>, vector<36x4xbf16>
    %cst_7 = arith.constant dense<0.000000e+00> : vector<256x4xf32>
    %32 = tpu.matmul %30, %31, %cst_7 {dimension_numbers = #tpu.dot_dimension_numbers<[1], [0], [0], [1], [0, 0, 1, 1], [], []>} : vector<256x36xbf16>, vector<36x4xbf16>, vector<256x4xf32> -> vector<256x4xf32>
    %c0_8 = arith.constant 0 : index
    %c0_9 = arith.constant 0 : index
    %33 = vector.load %arg3[%c0_8, %c0_9] : memref<1x4xf32, #tpu.memory_space<vmem>>, vector<1x4xf32>
    %34 = vector.broadcast %33 : vector<1x4xf32> to vector<256x4xf32>
    %35 = arith.addf %32, %34 : vector<256x4xf32>
    %36 = vector.shape_cast %35 : vector<256x4xf32> to vector<16x16x4xf32>
    %cst_10 = arith.constant 0.000000e+00 : f32
    %37 = vector.broadcast %cst_10 : f32 to vector<16x16x4xf32>
    %38 = arith.maximumf %36, %37 : vector<16x16x4xf32>
    %39 = arith.truncf %38 : vector<16x16x4xf32> to vector<16x16x4xbf16>
    %cst_11 = arith.constant 0.000000e+00 : bf16
    %40 = vector.broadcast %cst_11 : bf16 to vector<1x16x4xbf16>
    %41 = tpu.concatenate %40, %39, %40 in 0 : vector<1x16x4xbf16>, vector<16x16x4xbf16>, vector<1x16x4xbf16> -> vector<18x16x4xbf16>
    %cst_12 = arith.constant 0.000000e+00 : bf16
    %42 = vector.broadcast %cst_12 : bf16 to vector<18x1x4xbf16>
    %43 = tpu.concatenate %42, %41, %42 in 1 : vector<18x1x4xbf16>, vector<18x16x4xbf16>, vector<18x1x4xbf16> -> vector<18x18x4xbf16>
    %44 = vector.extract_strided_slice %43 {offsets = [0, 0, 0], sizes = [18, 16, 4], strides = [1, 1, 1]} : vector<18x18x4xbf16> to vector<18x16x4xbf16>
    %45 = vector.extract_strided_slice %43 {offsets = [0, 1, 0], sizes = [18, 16, 4], strides = [1, 1, 1]} : vector<18x18x4xbf16> to vector<18x16x4xbf16>
    %46 = vector.extract_strided_slice %43 {offsets = [0, 2, 0], sizes = [18, 16, 4], strides = [1, 1, 1]} : vector<18x18x4xbf16> to vector<18x16x4xbf16>
    %47 = vector.extract_strided_slice %44 {offsets = [0, 0, 0], sizes = [16, 16, 4], strides = [1, 1, 1]} : vector<18x16x4xbf16> to vector<16x16x4xbf16>
    %48 = vector.shape_cast %47 : vector<16x16x4xbf16> to vector<256x4xbf16>
    %49 = vector.extract_strided_slice %45 {offsets = [0, 0, 0], sizes = [16, 16, 4], strides = [1, 1, 1]} : vector<18x16x4xbf16> to vector<16x16x4xbf16>
    %50 = vector.shape_cast %49 : vector<16x16x4xbf16> to vector<256x4xbf16>
    %51 = vector.extract_strided_slice %46 {offsets = [0, 0, 0], sizes = [16, 16, 4], strides = [1, 1, 1]} : vector<18x16x4xbf16> to vector<16x16x4xbf16>
    %52 = vector.shape_cast %51 : vector<16x16x4xbf16> to vector<256x4xbf16>
    %53 = vector.extract_strided_slice %44 {offsets = [1, 0, 0], sizes = [16, 16, 4], strides = [1, 1, 1]} : vector<18x16x4xbf16> to vector<16x16x4xbf16>
    %54 = vector.shape_cast %53 : vector<16x16x4xbf16> to vector<256x4xbf16>
    %55 = vector.extract_strided_slice %45 {offsets = [1, 0, 0], sizes = [16, 16, 4], strides = [1, 1, 1]} : vector<18x16x4xbf16> to vector<16x16x4xbf16>
    %56 = vector.shape_cast %55 : vector<16x16x4xbf16> to vector<256x4xbf16>
    %57 = vector.extract_strided_slice %46 {offsets = [1, 0, 0], sizes = [16, 16, 4], strides = [1, 1, 1]} : vector<18x16x4xbf16> to vector<16x16x4xbf16>
    %58 = vector.shape_cast %57 : vector<16x16x4xbf16> to vector<256x4xbf16>
    %59 = vector.extract_strided_slice %44 {offsets = [2, 0, 0], sizes = [16, 16, 4], strides = [1, 1, 1]} : vector<18x16x4xbf16> to vector<16x16x4xbf16>
    %60 = vector.shape_cast %59 : vector<16x16x4xbf16> to vector<256x4xbf16>
    %61 = vector.extract_strided_slice %45 {offsets = [2, 0, 0], sizes = [16, 16, 4], strides = [1, 1, 1]} : vector<18x16x4xbf16> to vector<16x16x4xbf16>
    %62 = vector.shape_cast %61 : vector<16x16x4xbf16> to vector<256x4xbf16>
    %63 = vector.extract_strided_slice %46 {offsets = [2, 0, 0], sizes = [16, 16, 4], strides = [1, 1, 1]} : vector<18x16x4xbf16> to vector<16x16x4xbf16>
    %64 = vector.shape_cast %63 : vector<16x16x4xbf16> to vector<256x4xbf16>
    %65 = tpu.concatenate %48, %50, %52, %54, %56, %58, %60, %62, %64 in 1 : vector<256x4xbf16>, vector<256x4xbf16>, vector<256x4xbf16>, vector<256x4xbf16>, vector<256x4xbf16>, vector<256x4xbf16>, vector<256x4xbf16>, vector<256x4xbf16>, vector<256x4xbf16> -> vector<256x36xbf16>
    %c0_13 = arith.constant 0 : index
    %c0_14 = arith.constant 0 : index
    %66 = vector.load %arg4[%c0_13, %c0_14] : memref<36x4xbf16, #tpu.memory_space<vmem>>, vector<36x4xbf16>
    %cst_15 = arith.constant dense<0.000000e+00> : vector<256x4xf32>
    %67 = tpu.matmul %65, %66, %cst_15 {dimension_numbers = #tpu.dot_dimension_numbers<[1], [0], [0], [1], [0, 0, 1, 1], [], []>} : vector<256x36xbf16>, vector<36x4xbf16>, vector<256x4xf32> -> vector<256x4xf32>
    %c0_16 = arith.constant 0 : index
    %c0_17 = arith.constant 0 : index
    %68 = vector.load %arg5[%c0_16, %c0_17] : memref<1x4xf32, #tpu.memory_space<vmem>>, vector<1x4xf32>
    %69 = vector.broadcast %68 : vector<1x4xf32> to vector<256x4xf32>
    %70 = arith.addf %67, %69 : vector<256x4xf32>
    %71 = vector.shape_cast %70 : vector<256x4xf32> to vector<16x16x4xf32>
    %72 = arith.addf %71, %1 : vector<16x16x4xf32>
    %c0_18 = arith.constant 0 : index
    %c0_19 = arith.constant 0 : index
    %c0_20 = arith.constant 0 : index
    %c0_21 = arith.constant 0 : index
    %73 = vector.load %arg6[%c0_18, %c0_19, %c0_20, %c0_21] : memref<1x16x16x4xf32, #tpu.memory_space<vmem>>, vector<1x16x16x4xf32>
    %74 = vector.shape_cast %73 : vector<1x16x16x4xf32> to vector<16x16x4xf32>
    %75 = vector.shape_cast %72 : vector<16x16x4xf32> to vector<1x16x16x4xf32>
    tpu.vector_store %arg6[%c0_18, %c0_19, %c0_20, %c0_21], %75 {strides = array<i32>} : memref<1x16x16x4xf32, #tpu.memory_space<vmem>>, vector<1x16x16x4xf32>,
    return
  }
  func.func @transform_0(%arg0: i32) -> (i32, i32, i32, i32) {
    %c0_i32 = arith.constant 0 : i32
    %c0_i32_0 = arith.constant 0 : i32
    %c0_i32_1 = arith.constant 0 : i32
    %c0_i32_2 = arith.constant 0 : i32
    return %arg0, %c0_i32, %c0_i32_0, %c0_i32_1 : i32, i32, i32, i32
  }
  func.func @transform_1(%arg0: i32) -> (i32, i32) {
    %c0_i32 = arith.constant 0 : i32
    %c0_i32_0 = arith.constant 0 : i32
    %c0_i32_1 = arith.constant 0 : i32
    return %c0_i32, %c0_i32_0 : i32, i32
  }
  func.func @transform_2(%arg0: i32) -> (i32, i32) {
    %c0_i32 = arith.constant 0 : i32
    %c0_i32_0 = arith.constant 0 : i32
    %c0_i32_1 = arith.constant 0 : i32
    return %c0_i32, %c0_i32_0 : i32, i32
  }
  func.func @transform_3(%arg0: i32) -> (i32, i32) {
    %c0_i32 = arith.constant 0 : i32
    %c0_i32_0 = arith.constant 0 : i32
    %c0_i32_1 = arith.constant 0 : i32
    return %c0_i32, %c0_i32_0 : i32, i32
  }
  func.func @transform_4(%arg0: i32) -> (i32, i32) {
    %c0_i32 = arith.constant 0 : i32
    %c0_i32_0 = arith.constant 0 : i32
    %c0_i32_1 = arith.constant 0 : i32
    return %c0_i32, %c0_i32_0 : i32, i32
  }
  func.func @transform_5(%arg0: i32) -> (i32, i32, i32, i32) {
    %c0_i32 = arith.constant 0 : i32
    %c0_i32_0 = arith.constant 0 : i32
    %c0_i32_1 = arith.constant 0 : i32
    %c0_i32_2 = arith.constant 0 : i32
    return %arg0, %c0_i32, %c0_i32_0, %c0_i32_1 : i32, i32, i32, i32
  }
}

</mosaic_0001>

<bundles_post_ra>
// kernel: tpu_custom_call.1
= control target key start
LH: loop header
LB: loop body
LE: loop exit
PB: predicated region body
PF: predicated region fallthrough
CT: control target
= control target key end

     0   :  { %s3137_s18 = smov 0   ;;  %s4540_s0 = inlined_call_operand.vmem [shape: f32[2,16,16,4], index: 0, kind: input, shape index: {}]   ;;  %s4541_s1 = inlined_call_operand.vmem [shape: bf16[36,4], index: 1, kind: input, shape index: {}]   ;;  %s4542_s2 = inlined_call_operand.vmem [shape: f32[1,4], index: 2, kind: input, shape index: {}]   ;;  %s4543_s3 = inlined_call_operand.vmem [shape: bf16[36,4], index: 3, kind: input, shape index: {}]   ;;  %s4544_s4 = inlined_call_operand.vmem [shape: f32[1,4], index: 4, kind: input, shape index: {}]   ;;  %s4545_s5 = inlined_call_operand.vmem [shape: f32[2,16,16,4], index: 5, kind: output, shape index: {}]  }
   0x1 LB: > { %s2865_s19 = sadd.s32 4294967295, %s3096_s18   ;;  %p2869_p0 = scmp.ge.s32.totalorder %s3096_s18, 1  ;;  %s3096_s18 = sphi %s3137_s18, %s15_s18  }
   0x2   : > { %p187_p1 = scmp.lt.s32.totalorder %s3096_s18, 3 }
   0x4   : > { %p188_p2 = pnand %p2869_p0, %p187_p1 }
   0x5   : > { %vm459_vm0 = vcmask (!%p188_p2), 1040384   ;;  %vm460_vm1 = vsmask.f32 (!%p188_p2), 256  ;;  %v3098_v0 = vmov (!%p188_p2), 0   ;;  %p215_p3 = scmp.lt.s32.totalorder (!%p188_p2), %s2865_s19, 1  ;;  %vm721_vm3 = vcmask (!%p188_p2), 1046528  }
   0x6   : > { %191 = sbr.rel (%p188_p2) target bundleno = 998 (0x3e6), region = 40  ;;  %v309_v1 = vrot.slane (!%p188_p2), %v3098_v0, 7  ;;  %vm3145_vm2 = vmand (!%p188_p2), %vm459_vm0, %vm460_vm1  ;;  %vm496_vm4 = vsmask.f32 (!%p188_p2), 7424  ;;  %s3099_s24 = smov (!%p188_p2), 8   ;;  %v3051_v58 = vld [vmem:[%s4541_s1] sm:$0xff] (!%p188_p2)  }
   0x7   : > { %s3100_s25 = smov (!%p188_p2), 4   ;;  %s3101_s26 = smov (!%p188_p2), 12   ;;  %2956 = vmatprep.subr.bf16.mxu0 (!%p188_p2), %v3051_v58  ;;  %vm1367_vm5 = vcmask (!%p188_p2), 1041408   ;;  %vm1043_vm6 = vcmask (!%p188_p2), 31744   ;;  %vm1076_vm7 = vcmask (!%p188_p2), 64512   ;;  %vm1109_vm8 = vcmask (!%p188_p2), 97280  }
   0x8   : > { %v3151_v3 = vsel (!%p188_p2), %vm3145_vm2, 0, %v309_v1  ;;  %v479_v4 = vsel (!%p188_p2), %vm3145_vm2, %v309_v1, 0  ;;  %s3102_s29 = smov (!%p188_p2), 24   ;;  %2957 = vmatpush3.bf16.msra.mxu0 (!%p188_p2), %v3051_v58  ;;  %s3103_s7 = smov (!%p188_p2), 20   ;;  %vm1142_vm9 = vcmask (!%p188_p2), 130048   ;;  %vm1175_vm10 = vcmask (!%p188_p2), 162816  }
   0x9   : > { %v722_v5 = vrot.slane (!%p188_p2), %v3151_v3, 1  ;;  %v723_v6 = vrot.slane (!%p188_p2), %v479_v4, 1  ;;  %v498_v7 = vshrl.u32 (!%p188_p2), %v3151_v3, 16  ;;  %v500_v8 = vshll.u32 (!%p188_p2), %v3151_v3, 16  ;;  %s3104_s8 = smov (!%p188_p2), 16   ;;  %s3105_s9 = smov (!%p188_p2), 28  }
   0xa   : > { %v505_v9 = vshll.u32 (!%p188_p2), %v479_v4, 16  ;;  %s3106_s10 = smov (!%p188_p2), 32   ;;  %vm1208_vm11 = vcmask (!%p188_p2), 195584   ;;  %vm1241_vm12 = vcmask (!%p188_p2), 228352   ;;  %vm1274_vm13 = vcmask (!%p188_p2), 261120  }
   0xb   : > { %v3162_v10 = vsel (!%p188_p2), %vm721_vm3, %v722_v5, %v723_v6  ;;  %v502_v11 = vrot.slane (!%p188_p2), %v500_v8, 1  ;;  %v3052_v8 = vld [vmem:[%s4541_s1 + $0x8] sm:$0xff] (!%p188_p2)   ;;  %vm1334_vm14 = vcmask (!%p188_p2), 293888  }
   0xc   : > { %819 = vrot.lane.b32.xlu1 (!%p188_p2), %v3162_v10, %s3099_s24  ;;  %v507_v12 = vrot.slane (!%p188_p2), %v505_v9, 1  ;;  %2958 = vmatprep.subr.bf16.mxu0 (!%p188_p2), %v3052_v8 }
   0xd   : > { %s4549_s19 = smov (!%p215_p3, %s2865_s19), 1  ;;  %v503_v16 = vor.u32 %v502_v11, %v498_v7  ;;  %2959 = vmatpush3.bf16.msra.mxu0 %v3052_v8 }
   0xe   : > { %s2916_s20 = sshll.u32 %s4549_s19, 8 }
   0xf   : > { %s3169_s23 = scalar_lea.vmem %s4540_s0, %s2916_s20  ;;  %v3180_v26 = vsel %vm496_vm4, %v503_v16, %v507_v12  ;;  %s4408_s6 = scalar_lea.vmem %s4545_s5, %s2916_s20 }
  0x10   : > { %v228_v13 = vld [vmem:[%s3169_s23 + $0x10] sm:$0xff]  ;;  %v229_v14 = vld [vmem:[%s3169_s23 + $0x18] sm:$0xff]  ;;  %v226_v15 = vld [vmem:[%s3169_s23] sm:$0xff]  ;;  %787 = vrot.lane.b32.xlu0 %v3180_v26, %s3100_s25 }
  0x11   : > { %v260_v17 = vmax.f32 %v228_v13, 0.0  ;;  %v261_v18 = vmax.f32 %v229_v14, 0.0  ;;  %v227_v19 = vld [vmem:[%s3169_s23 + $0x8] sm:$0xff]  ;;  %v258_v20 = vmax.f32 %v226_v15, 0.0  ;;  %v230_v21 = vld [vmem:[%s3169_s23 + $0x20] sm:$0xff]  ;;  %v232_v40 = vld [vmem:[%s3169_s23 + $0x30] sm:$0xff] }
  0x12   : > { %v231_v22 = vld [vmem:[%s3169_s23 + $0x28] sm:$0xff]  ;;  %v259_v23 = vmax.f32 %v227_v19, 0.0  ;;  %v262_v24 = vmax.f32 %v230_v21, 0.0  ;;  %v233_v45 = vld [vmem:[%s3169_s23 + $0x38] sm:$0xff]  ;;  %v264_v48 = vmax.f32 %v232_v40, 0.0 }
  0x13   : > { %v263_v25 = vmax.f32 %v231_v22, 0.0  ;;  %v291_v27 = vpack.c.bf16 %v261_v18, %v260_v17  ;;  %v265_v56 = vmax.f32 %v233_v45, 0.0  ;;  %v234_v18 = vld [vmem:[%s3169_s23 + $0x40] sm:$0xff]  ;;  %v235_v19 = vld [vmem:[%s3169_s23 + $0x48] sm:$0xff] }
  0x14   : > { %v290_v28 = vpack.c.bf16 %v259_v23, %v258_v20  ;;  %v3053_v40 = vld [vmem:[%s4541_s1 + $0x10] ss:$0 sps:$4 sm:$0x33]  }
  0x15   : > { %v292_v29 = vpack.c.bf16 %v263_v25, %v262_v24  ;;  %v321_v30 = vshrl.u32 %v291_v27, 16  ;;  %v324_v31 = vshll.u32 %v291_v27, 16  ;;  %v293_v7 = vpack.c.bf16 %v265_v56, %v264_v48  ;;  %v237_v48 = vld [vmem:[%s3169_s23 + $0x58] sm:$0xff]  ;;  %3032 = vmatprep.subr.msk.bf16.mxu0 %vm1367_vm5, %v3053_v40 }
  0x16   : > { %v314_v32 = vshrl.u32 %v290_v28, 16  ;;  %v317_v33 = vshll.u32 %v290_v28, 16  ;;  %v266_v25 = vmax.f32 %v234_v18, 0.0  ;;  %v267_v27 = vmax.f32 %v235_v19, 0.0 }
  0x17   : > { %v328_v34 = vshrl.u32 %v292_v29, 16  ;;  %v331_v35 = vshll.u32 %v292_v29, 16  ;;  %v323_v36 = vrot.slane %v321_v30, 7  ;;  %v335_v17 = vshrl.u32 %v293_v7, 16 }
  0x18   : > { %v316_v37 = vrot.slane %v314_v32, 7  ;;  %v338_v24 = vshll.u32 %v293_v7, 16  ;;  %v294_v30 = vpack.c.bf16 %v267_v27, %v266_v25 }
  0x19   : > { %v330_v38 = vrot.slane %v328_v34, 7  ;;  %v326_v39 = vor.u32 %v324_v31, %v323_v36  ;;  %v481_v47 = vsel %vm3145_vm2, %v323_v36, 0  ;;  %v337_v23 = vrot.slane %v335_v17, 7 }
  0x1a   : > { %v319_v41 = vor.u32 %v317_v33, %v316_v37  ;;  %v480_v43 = vsel %vm3145_vm2, %v316_v37, 0  ;;  %v729_v60 = vrot.slane %v481_v47, 1  ;;  %v529_v61 = vshll.u32 %v481_v47, 16  ;;  %v236_v47 = vld [vmem:[%s3169_s23 + $0x50] sm:$0xff] }
  0x1b   : > { %v333_v42 = vor.u32 %v331_v35, %v330_v38  ;;  %v3189_v44 = vsel %vm3145_vm2, 0, %v326_v39  ;;  %v726_v51 = vrot.slane %v480_v43, 1  ;;  %v517_v54 = vshll.u32 %v480_v43, 16 }
  0x1c   : > { %853 = vrot.lane.b32.xlu1 %v3189_v44, %s3101_s26  ;;  %v3196_v46 = vsel %vm3145_vm2, 0, %v319_v41  ;;  %v524_v55 = vshll.u32 %v3189_v44, 16  ;;  %v728_v59 = vrot.slane %v3189_v44, 1  ;;  %v522_v63 = vshrl.u32 %v3189_v44, 16 }
  0x1d   : > { %851 = vrot.lane.b32.xlu0 %v3196_v46, %s3101_s26  ;;  %v3204_v49 = vsel %vm3145_vm2, 0, %v333_v42  ;;  %v725_v50 = vrot.slane %v3196_v46, 1  ;;  %v512_v52 = vshll.u32 %v3196_v46, 16  ;;  %v510_v53 = vshrl.u32 %v3196_v46, 16 }
  0x1e   : > { %v526_v0 = vrot.slane %v524_v55, 1  ;;  %v536_v1 = vshll.u32 %v3204_v49, 16  ;;  %v519_v5 = vrot.slane %v517_v54, 1  ;;  %v482_v6 = vsel %vm3145_vm2, %v330_v38, 0 }
  0x1f   : > { %v514_v57 = vrot.slane %v512_v52, 1  ;;  %v727_v62 = vsel %vm721_vm3, %v725_v50, %v726_v51  ;;  %v730_v9 = vsel %vm721_vm3, %v728_v59, %v729_v60  ;;  %v531_v11 = vrot.slane %v529_v61, 1 }
  0x20   : > { %949 = vrot.lane.b32.xlu1 %v3204_v49, %s3102_s29  ;;  %v527_v12 = vor.u32 %v526_v0, %v522_v63  ;;  %v534_v13 = vshrl.u32 %v3204_v49, 16  ;;  %v538_v14 = vrot.slane %v536_v1, 1  ;;  %v541_v15 = vshll.u32 %v482_v6, 16 }
  0x21   : > { %947 = vrot.lane.b32.xlu0 %v3189_v44, %s3102_s29  ;;  %v515_v4 = vor.u32 %v514_v57, %v510_v53  ;;  %v340_v29 = vor.u32 %v338_v24, %v337_v23  ;;  %v731_v31 = vrot.slane %v3204_v49, 1  ;;  %v732_v32 = vrot.slane %v482_v6, 1  ;;  %v239_v6 = vld [vmem:[%s3169_s23 + $0x68] sm:$0xff] }
  0x22   : > { %v532_v20 = vsel %vm496_vm4, %v527_v12, %v531_v11  ;;  %v539_v21 = vor.u32 %v538_v14, %v534_v13  ;;  %v543_v22 = vrot.slane %v541_v15, 1  ;;  %v342_v34 = vshrl.u32 %v294_v30, 16 }
  0x23   : > { %v520_v16 = vsel %vm496_vm4, %v515_v4, %v519_v5  ;;  %v3244_v33 = vsel %vm3145_vm2, 0, %v340_v29  ;;  %v733_v36 = vsel %vm721_vm3, %v731_v31, %v732_v32  ;;  %v483_v37 = vsel %vm3145_vm2, %v337_v23, 0  ;;  %v238_v5 = vld [vmem:[%s3169_s23 + $0x60] sm:$0xff]  ;;  %v240_v31 = vld [vmem:[%s3169_s23 + $0x70] sm:$0xff]  ;;  %v241_v32 = vld [vmem:[%s3169_s23 + $0x78] sm:$0xff] }
  0x24   : > { %821 = vrot.lane.b32.xlu1 %v727_v62, %s3099_s24  ;;  %v544_v28 = vsel %vm496_vm4, %v539_v21, %v543_v22  ;;  %v548_v35 = vshll.u32 %v3244_v33, 16  ;;  %v344_v38 = vrot.slane %v342_v34, 7  ;;  %v345_v39 = vshll.u32 %v294_v30, 16 }
  0x25   : > { %915 = vrot.lane.b32.xlu0 %v727_v62, %s3103_s7  ;;  %v546_v41 = vshrl.u32 %v3244_v33, 16  ;;  %v553_v43 = vshll.u32 %v483_v37, 16  ;;  %v1369_v50 = vsel %vm1367_vm5, %v3053_v40, 0  ;;  %v268_v54 = vmax.f32 %v236_v47, 0.0 }
  0x26   : > { %v550_v42 = vrot.slane %v548_v35, 1  ;;  %v347_v45 = vor.u32 %v345_v39, %v344_v38  ;;  %2961 = vmatpush3.bf16.msra.mxu0 %v1369_v50  ;;  %v269_v55 = vmax.f32 %v237_v48, 0.0  ;;  %v734_v57 = vrot.slane %v3244_v33, 1 }
  0x27   : > { %v555_v52 = vrot.slane %v553_v43, 1  ;;  %v735_v58 = vrot.slane %v483_v37, 1  ;;  %v484_v60 = vsel %vm3145_vm2, %v344_v38, 0  ;;  %v270_v12 = vmax.f32 %v238_v5, 0.0 }
  0x28   : > { %917 = vrot.lane.b32.xlu1 %v730_v9, %s3103_s7  ;;  %v551_v51 = vor.u32 %v550_v42, %v546_v41  ;;  %v3266_v53 = vsel %vm3145_vm2, 0, %v347_v45  ;;  %v295_v61 = vpack.c.bf16 %v269_v55, %v268_v54  ;;  %v565_v1 = vshll.u32 %v484_v60, 16  ;;  %v242_v54 = vld [vmem:[%s3169_s23 + $0x80] sm:$0xff]  ;;  %v243_v55 = vld [vmem:[%s3169_s23 + $0x88] sm:$0xff] }
  0x29   : > { %789 = vrot.lane.b32.xlu0 %v520_v16, %s3100_s25  ;;  %v560_v59 = vshll.u32 %v3266_v53, 16  ;;  %v736_v62 = vsel %vm721_vm3, %v734_v57, %v735_v58  ;;  %v558_v63 = vshrl.u32 %v3266_v53, 16  ;;  %v271_v13 = vmax.f32 %v239_v6, 0.0 }
  0x2a   : > { %v556_v56 = vsel %vm496_vm4, %v551_v51, %v555_v52  ;;  %v349_v4 = vshrl.u32 %v295_v61, 16  ;;  %v567_v8 = vrot.slane %v565_v1, 1  ;;  %v352_v11 = vshll.u32 %v295_v61, 16 }
  0x2b   : > { %v562_v0 = vrot.slane %v560_v59, 1  ;;  %v737_v17 = vrot.slane %v3266_v53, 1  ;;  %v738_v18 = vrot.slane %v484_v60, 1  ;;  %v272_v37 = vmax.f32 %v240_v31, 0.0 }
  0x2c   : > { %885 = vrot.lane.b32.xlu1 %v532_v20, %s3104_s8  ;;  %v273_v38 = vmax.f32 %v241_v32, 0.0  ;;  %v274_v60 = vmax.f32 %v242_v54, 0.0  ;;  %v275_v61 = vmax.f32 %v243_v55, 0.0 }
  0x2d   : > { %883 = vrot.lane.b32.xlu0 %v520_v16, %s3104_s8  ;;  %v563_v7 = vor.u32 %v562_v0, %v558_v63  ;;  %v296_v16 = vpack.c.bf16 %v271_v13, %v270_v12  ;;  %v739_v22 = vsel %vm721_vm3, %v737_v17, %v738_v18  ;;  %v244_v17 = vld [vmem:[%s3169_s23 + $0x90] sm:$0xff]  ;;  %v245_v18 = vld [vmem:[%s3169_s23 + $0x98] sm:$0xff] }
  0x2e   : > { %v297_v45 = vpack.c.bf16 %v273_v38, %v272_v37  ;;  %v298_v0 = vpack.c.bf16 %v275_v61, %v274_v60 }
  0x2f   : > { %v568_v14 = vsel %vm496_vm4, %v563_v7, %v567_v8  ;;  %v359_v25 = vshll.u32 %v296_v16, 16 }
  0x30   : > { %981 = vrot.lane.b32.xlu1 %v544_v28, %s3105_s9  ;;  %v363_v52 = vshrl.u32 %v297_v45, 16  ;;  %v366_v59 = vshll.u32 %v297_v45, 16  ;;  %v370_v6 = vshrl.u32 %v298_v0, 16  ;;  %v373_v12 = vshll.u32 %v298_v0, 16 }
  0x31   : > { %979 = vrot.lane.b32.xlu0 %v532_v20, %s3105_s9 }
  0x32   : > { %v365_v58 = vrot.slane %v363_v52, 7 }
  0x34   : > { %791 = vrot.lane.b32.xlu1 %v532_v20, %s3100_s25  ;;  %v356_v20 = vshrl.u32 %v296_v16, 16  ;;  %v368_v63 = vor.u32 %v366_v59, %v365_v58 }
  0x35   : > { %1011 = vrot.lane.b32.xlu0 %v730_v9, %s3106_s10 }
  0x36   : > { %v358_v24 = vrot.slane %v356_v20, 7  ;;  %v3341_v5 = vsel %vm3145_vm2, 0, %v368_v63 }
  0x37   : > { %v596_v7 = vshll.u32 %v3341_v5, 16  ;;  %v594_v13 = vshrl.u32 %v3341_v5, 16 }
  0x38   : > { %793 = vrot.lane.b32.xlu1 %v544_v28, %s3100_s25  ;;  %v361_v30 = vor.u32 %v359_v25, %v358_v24  ;;  %v486_v43 = vsel %vm3145_vm2, %v358_v24, 0  ;;  %v277_v24 = vmax.f32 %v245_v18, 0.0  ;;  %v248_v18 = vld [vmem:[%s3169_s23 + $0xb0] sm:$0xff] }
  0x39   : > { %1013 = vrot.lane.b32.xlu0 %v733_v36, %s3106_s10  ;;  %v589_v51 = vshll.u32 %v486_v43, 16 }
  0x3b   : > { %v591_v57 = vrot.slane %v589_v51, 1 }
  0x3c   : > { %825 = vrot.lane.b32.xlu1 %v733_v36, %s3099_s24 }
  0x3d   : > { %823 = vrot.lane.b32.xlu0 %v730_v9, %s3099_s24  ;;  %v351_v9 = vrot.slane %v349_v4, 7  ;;  %v744_v4 = vrot.slane %v486_v43, 1 }
  0x3f   : > { %v354_v15 = vor.u32 %v352_v11, %v351_v9  ;;  %v485_v23 = vsel %vm3145_vm2, %v351_v9, 0  ;;  %v487_v9 = vsel %vm3145_vm2, %v365_v58, 0  ;;  %v372_v11 = vrot.slane %v370_v6, 7 }
  0x40   : > { %857 = vrot.lane.b32.xlu1 %v3244_v33, %s3101_s26  ;;  %v577_v29 = vshll.u32 %v485_v23, 16  ;;  %v741_v41 = vrot.slane %v485_v23, 1  ;;  %v276_v23 = vmax.f32 %v244_v17, 0.0 }
  0x41   : > { %855 = vrot.lane.b32.xlu0 %v3204_v49, %s3101_s26  ;;  %v3295_v19 = vsel %vm3145_vm2, 0, %v354_v15  ;;  %v601_v15 = vshll.u32 %v487_v9, 16  ;;  %v375_v16 = vor.u32 %v373_v12, %v372_v11 }
  0x42   : > { %v572_v21 = vshll.u32 %v3295_v19, 16  ;;  %v570_v27 = vshrl.u32 %v3295_v19, 16  ;;  %v579_v35 = vrot.slane %v577_v29, 1  ;;  %v740_v40 = vrot.slane %v3295_v19, 1 }
  0x43   : > { %v299_v31 = vpack.c.bf16 %v277_v24, %v276_v23 }
  0x44   : > { %889 = vrot.lane.b32.xlu1 %v556_v56, %s3104_s8  ;;  %v742_v47 = vsel %vm721_vm3, %v740_v40, %v741_v41  ;;  %v247_v40 = vld [vmem:[%s3169_s23 + $0xa8] sm:$0xff] }
  0x45   : > { %887 = vrot.lane.b32.xlu0 %v544_v28, %s3104_s8  ;;  %v574_v28 = vrot.slane %v572_v21, 1  ;;  %v603_v21 = vrot.slane %v601_v15, 1  ;;  %v377_v38 = vshrl.u32 %v299_v31, 16  ;;  %v279_v51 = vmax.f32 %v247_v40, 0.0 }
  0x47   : > { %v575_v34 = vor.u32 %v574_v28, %v570_v27  ;;  %v746_v27 = vrot.slane %v3341_v5, 1  ;;  %v747_v28 = vrot.slane %v487_v9, 1 }
  0x48   : > { %921 = vrot.lane.b32.xlu1 %v736_v62, %s3103_s7 }
  0x49   : > { %919 = vrot.lane.b32.xlu0 %v733_v36, %s3103_s7  ;;  %v3312_v36 = vsel %vm3145_vm2, 0, %v361_v30  ;;  %v580_v39 = vsel %vm496_vm4, %v575_v34, %v579_v35  ;;  %v488_v30 = vsel %vm3145_vm2, %v372_v11, 0  ;;  %v748_v32 = vsel %vm721_vm3, %v746_v27, %v747_v28 }
  0x4a   : > { %v584_v42 = vshll.u32 %v3312_v36, 16  ;;  %v582_v48 = vshrl.u32 %v3312_v36, 16  ;;  %v743_v1 = vrot.slane %v3312_v36, 1  ;;  %v613_v37 = vshll.u32 %v488_v30, 16 }
  0x4b   : > { %v750_v60 = vrot.slane %v488_v30, 1 }
  0x4c   : > { %953 = vrot.lane.b32.xlu1 %v3266_v53, %s3102_s29  ;;  %v586_v50 = vrot.slane %v584_v42, 1  ;;  %v745_v8 = vsel %vm721_vm3, %v743_v1, %v744_v4  ;;  %v615_v45 = vrot.slane %v613_v37, 1 }
  0x4d   : > { %951 = vrot.lane.b32.xlu0 %v3244_v33, %s3102_s29 }
  0x50   : > { %985 = vrot.lane.b32.xlu1 %v568_v14, %s3105_s9 }
  0x51   : > { %983 = vrot.lane.b32.xlu0 %v556_v56, %s3105_s9 }
  0x54   : > { %795 = vrot.lane.b32.xlu1 %v556_v56, %s3100_s25  ;;  %v587_v56 = vor.u32 %v586_v50, %v582_v48  ;;  %v380_v48 = vshll.u32 %v299_v31, 16 }
  0x55   : > { %1015 = vrot.lane.b32.xlu0 %v736_v62, %s3106_s10 }
  0x58   : > { %797 = vrot.lane.b32.xlu1 %v568_v14, %s3100_s25 }
  0x59   : > { %1017 = vrot.lane.b32.xlu0 %v739_v22, %s3106_s10 }
  0x5c   : > { %829 = vrot.lane.b32.xlu1 %v739_v22, %s3099_s24 }
  0x5d   : > { %827 = vrot.lane.b32.xlu0 %v736_v62, %s3099_s24  ;;  %v592_v62 = vsel %vm496_vm4, %v587_v56, %v591_v57 }
  0x60   : > { %861 = vrot.lane.b32.xlu1 %v3295_v19, %s3101_s26 }
  0x61   : > { %859 = vrot.lane.b32.xlu0 %v3266_v53, %s3101_s26 }
  0x64   : > { %893 = vrot.lane.b32.xlu1 %v580_v39, %s3104_s8 }
  0x65   : > { %891 = vrot.lane.b32.xlu0 %v568_v14, %s3104_s8  ;;  %v598_v14 = vrot.slane %v596_v7, 1 }
  0x67   : > { %v599_v20 = vor.u32 %v598_v14, %v594_v13 }
  0x68   : > { %925 = vrot.lane.b32.xlu1 %v742_v47, %s3103_s7 }
  0x69   : > { %923 = vrot.lane.b32.xlu0 %v739_v22, %s3103_s7  ;;  %v3358_v22 = vsel %vm3145_vm2, 0, %v375_v16  ;;  %v604_v25 = vsel %vm496_vm4, %v599_v20, %v603_v21  ;;  %v249_v20 = vld [vmem:[%s3169_s23 + $0xb8] sm:$0xff] }
  0x6a   : > { %v608_v29 = vshll.u32 %v3358_v22, 16  ;;  %v606_v34 = vshrl.u32 %v3358_v22, 16  ;;  %v749_v59 = vrot.slane %v3358_v22, 1  ;;  %v281_v30 = vmax.f32 %v249_v20, 0.0 }
  0x6c   : > { %957 = vrot.lane.b32.xlu1 %v3312_v36, %s3102_s29  ;;  %v610_v35 = vrot.slane %v608_v29, 1  ;;  %v3398_v4 = vsel %vm721_vm3, %v749_v59, %v750_v60 }
  0x6d   : > { %955 = vrot.lane.b32.xlu0 %v3295_v19, %s3102_s29 }
  0x6e   : > { %v611_v43 = vor.u32 %v610_v35, %v606_v34 }
  0x70   : > { %989 = vrot.lane.b32.xlu1 %v592_v62, %s3105_s9  ;;  %v3382_v52 = vsel %vm496_vm4, %v611_v43, %v615_v45 }
  0x71   : > { %987 = vrot.lane.b32.xlu0 %v580_v39, %s3105_s9 }
  0x74   : > { %799 = vrot.lane.b32.xlu1 %v580_v39, %s3100_s25  ;;  %v246_v39 = vld [vmem:[%s3169_s23 + $0xa0] sm:$0xff] }
  0x75   : > { %1019 = vrot.lane.b32.xlu0 %v742_v47, %s3106_s10  ;;  %v278_v50 = vmax.f32 %v246_v39, 0.0 }
  0x77   : > { %v300_v56 = vpack.c.bf16 %v279_v51, %v278_v50 }
  0x78   : > { %801 = vrot.lane.b32.xlu1 %v592_v62, %s3100_s25 }
  0x79   : > { %1021 = vrot.lane.b32.xlu0 %v745_v8, %s3106_s10 }
  0x7c   : > { %833 = vrot.lane.b32.xlu1 %v745_v8, %s3099_s24 }
  0x7d   : > { %831 = vrot.lane.b32.xlu0 %v742_v47, %s3099_s24  ;;  %v379_v47 = vrot.slane %v377_v38, 7 }
  0x7e   : > { %v820_v41 = vpop.permute.xlu1 %819 }
  0x7f   : > { %v382_v55 = vor.u32 %v380_v48, %v379_v47  ;;  %v489_v6 = vsel %vm3145_vm2, %v379_v47, 0 }
  0x80   : > { %865 = vrot.lane.b32.xlu1 %v3341_v5, %s3101_s26  ;;  %v625_v13 = vshll.u32 %v489_v6, 16  ;;  %v753_v38 = vrot.slane %v489_v6, 1 }
  0x81   : > { %863 = vrot.lane.b32.xlu0 %v3312_v36, %s3101_s26  ;;  %v3392_v61 = vsel %vm3145_vm2, 0, %v382_v55 }
  0x82   : > { %v788_v42 = vpop.permute.xlu0 %787  ;;  %v620_v0 = vshll.u32 %v3392_v61, 16  ;;  %v618_v11 = vshrl.u32 %v3392_v61, 16  ;;  %v752_v37 = vrot.slane %v3392_v61, 1 }
  0x83   : > { %v1045_v16 = vsel %vm1043_vm6, %v3151_v3, %v788_v42 }
  0x84   : > { %897 = vrot.lane.b32.xlu1 %v604_v25, %s3104_s8  ;;  %v622_v12 = vrot.slane %v620_v0, 1  ;;  %v3418_v27 = vsel %vm1076_vm7, %v1045_v16, %v820_v41  ;;  %v3442_v51 = vsel %vm721_vm3, %v752_v37, %v753_v38  ;;  %v250_v0 = vld [vmem:[%s3169_s23 + $0xc0] sm:$0xff] }
  0x85   : > { %895 = vrot.lane.b32.xlu0 %v592_v62, %s3104_s8  ;;  %v384_v62 = vshrl.u32 %v300_v56, 16 }
  0x86   : > { %v623_v24 = vor.u32 %v622_v12, %v618_v11 }
  0x87   : > { %v386_v7 = vrot.slane %v384_v62, 7 }
  0x88   : > { %929 = vrot.lane.b32.xlu1 %v748_v32, %s3103_s7 }
  0x89   : > { %927 = vrot.lane.b32.xlu0 %v745_v8, %s3103_s7  ;;  %v387_v8 = vshll.u32 %v300_v56, 16  ;;  %v490_v45 = vsel %vm3145_vm2, %v386_v7, 0 }
  0x8b   : > { %v389_v15 = vor.u32 %v387_v8, %v386_v7 }
  0x8c   : > { %961 = vrot.lane.b32.xlu1 %v3358_v22, %s3102_s29 }
  0x8d   : > { %959 = vrot.lane.b32.xlu0 %v3341_v5, %s3102_s29  ;;  %v3422_v29 = vsel %vm3145_vm2, 0, %v389_v15 }
  0x8e   : > { %v854_v54 = vpop.permute.xlu1 %853  ;;  %v632_v41 = vshll.u32 %v3422_v29, 16  ;;  %v630_v55 = vshrl.u32 %v3422_v29, 16 }
  0x8f   : > { %v852_v57 = vpop.permute.xlu0 %851 }
  0x90   : > { %993 = vrot.lane.b32.xlu1 %v3382_v52, %s3105_s9  ;;  %v1111_v31 = vsel %vm1109_vm8, %v3418_v27, %v852_v57  ;;  %v634_v56 = vrot.slane %v632_v41, 1  ;;  %v637_v57 = vshll.u32 %v490_v45, 16 }
  0x91   : > { %991 = vrot.lane.b32.xlu0 %v604_v25, %s3105_s9 }
  0x92   : > { %v3387_v58 = vpop.permute.xlu1 %949  ;;  %v635_v7 = vor.u32 %v634_v56, %v630_v55  ;;  %v639_v8 = vrot.slane %v637_v57, 1 }
  0x93   : > { %v948_v63 = vpop.permute.xlu0 %947 }
  0x94   : > { %803 = vrot.lane.b32.xlu1 %v604_v25, %s3100_s25  ;;  %v627_v25 = vrot.slane %v625_v13, 1  ;;  %v282_v13 = vmax.f32 %v250_v0, 0.0 }
  0x95   : > { %1023 = vrot.lane.b32.xlu0 %v748_v32, %s3106_s10 }
  0x96   : > { %v822_v1 = vpop.permute.xlu1 %821  ;;  %v628_v40 = vsel %vm496_vm4, %v623_v24, %v627_v25  ;;  %v755_v24 = vrot.slane %v3422_v29, 1  ;;  %v756_v25 = vrot.slane %v490_v45, 1 }
  0x97   : > { %v916_v9 = vpop.permute.xlu0 %915 }
  0x98   : > { %805 = vrot.lane.b32.xlu1 %v3382_v52, %s3100_s25 }
  0x99   : > { %1025 = vrot.lane.b32.xlu0 %v3398_v4, %s3106_s10 }
  0x9a   : > { %v918_v14 = vpop.permute.xlu1 %917 }
  0x9b   : > { %v790_v17 = vpop.permute.xlu0 %789 }
  0x9c   : > { %v1047_v21 = vsel %vm1043_vm6, %v3196_v46, %v790_v17  ;;  %837 = vrot.lane.b32.xlu1 %v3398_v4, %s3099_s24  ;;  %v280_v46 = vmax.f32 %v248_v18, 0.0 }
  0x9d   : > { %v1080_v23 = vsel %vm1076_vm7, %v1047_v21, %v822_v1  ;;  %835 = vrot.lane.b32.xlu0 %v748_v32, %s3099_s24  ;;  %v251_v1 = vld [vmem:[%s3169_s23 + $0xc8] sm:$0xff] }
  0x9e   : > { %v886_v28 = vpop.permute.xlu1 %885  ;;  %v1113_v34 = vsel %vm1109_vm8, %v1080_v23, %v854_v54  ;;  %v301_v47 = vpack.c.bf16 %v281_v30, %v280_v46 }
  0x9f   : > { %v884_v35 = vpop.permute.xlu0 %883  ;;  %v1146_v42 = vsel %vm1142_vm9, %v1113_v34, %v886_v28 }
  0xa0   : > { %v1144_v32 = vsel %vm1142_vm9, %v1111_v31, %v884_v35  ;;  %869 = vrot.lane.b32.xlu1 %v3392_v61, %s3101_s26  ;;  %v1179_v54 = vsel %vm1175_vm10, %v1146_v42, %v918_v14  ;;  %v391_v60 = vshrl.u32 %v301_v47, 16  ;;  %v394_v12 = vshll.u32 %v301_v47, 16  ;;  %v252_v47 = vld [vmem:[%s3169_s23 + $0xd0] sm:$0xff] }
  0xa1   : > { %v1177_v39 = vsel %vm1175_vm10, %v1144_v32, %v916_v9  ;;  %867 = vrot.lane.b32.xlu0 %v3358_v22, %s3101_s26  ;;  %v1212_v6 = vsel %vm1208_vm11, %v1179_v54, %v3387_v58  ;;  %v283_v14 = vmax.f32 %v251_v1, 0.0  ;;  %v757_v35 = vsel %vm721_vm3, %v755_v24, %v756_v25 }
  0xa2   : > { %v982_v43 = vpop.permute.xlu1 %981  ;;  %v1210_v50 = vsel %vm1208_vm11, %v1177_v39, %v948_v63  ;;  %v393_v11 = vrot.slane %v391_v60, 7  ;;  %v284_v56 = vmax.f32 %v252_v47, 0.0 }
  0xa3   : > { %v980_v48 = vpop.permute.xlu0 %979  ;;  %v1245_v58 = vsel %vm1241_vm12, %v1212_v6, %v982_v43  ;;  %v302_v20 = vpack.c.bf16 %v283_v14, %v282_v13 }
  0xa4   : > { %901 = vrot.lane.b32.xlu1 %v628_v40, %s3104_s8  ;;  %v1243_v62 = vsel %vm1241_vm12, %v1210_v50, %v980_v48  ;;  %v396_v18 = vor.u32 %v394_v12, %v393_v11  ;;  %v491_v32 = vsel %vm3145_vm2, %v393_v11, 0  ;;  %v253_v48 = vld [vmem:[%s3169_s23 + $0xd8] sm:$0xff] }
  0xa5   : > { %899 = vrot.lane.b32.xlu0 %v3382_v52, %s3104_s8  ;;  %v398_v46 = vshrl.u32 %v302_v20, 16  ;;  %v401_v38 = vshll.u32 %v302_v20, 16  ;;  %v649_v42 = vshll.u32 %v491_v32, 16  ;;  %v285_v57 = vmax.f32 %v253_v48, 0.0 }
  0xa6   : > { %v3448_v59 = vpop.permute.xlu1 %791  ;;  %v3478_v28 = vsel %vm3145_vm2, 0, %v396_v18  ;;  %v759_v1 = vrot.slane %v491_v32, 1  ;;  %v255_v32 = vld [vmem:[%s3169_s23 + $0xe8] sm:$0xff] }
  0xa7   : > { %v1012_v63 = vpop.permute.xlu0 %1011  ;;  %v644_v31 = vshll.u32 %v3478_v28, 16  ;;  %v400_v37 = vrot.slane %v398_v46, 7  ;;  %v651_v55 = vrot.slane %v649_v42, 1  ;;  %v758_v0 = vrot.slane %v3478_v28, 1 }
  0xa8   : > { %933 = vrot.lane.b32.xlu1 %v3442_v51, %s3103_s7  ;;  %v1276_v52 = vsel %vm1274_vm13, %v1243_v62, %v1012_v63 }
  0xa9   : > { %931 = vrot.lane.b32.xlu0 %v3398_v4, %s3103_s7  ;;  %2962 = vmatprep.mubr.msk.bf16.mxu0 %vm1334_vm14, %v1276_v52  ;;  %v640_v4 = vsel %vm496_vm4, %v635_v7, %v639_v8  ;;  %v646_v41 = vrot.slane %v644_v31, 1  ;;  %v403_v45 = vor.u32 %v401_v38, %v400_v37  ;;  %v3504_v6 = vsel %vm3145_vm2, %v400_v37, 0  ;;  %v254_v31 = vld [vmem:[%s3169_s23 + $0xe0] sm:$0xff] }
  0xaa   : > { %v3461_v9 = vpop.permute.xlu1 %793  ;;  %v303_v8 = vpack.c.bf16 %v285_v57, %v284_v56 }
  0xab   : > { %v1014_v15 = vpop.permute.xlu0 %1013  ;;  %v3497_v62 = vsel %vm3145_vm2, 0, %v403_v45  ;;  %v1051_v13 = vsel %vm1043_vm6, %v3204_v49, %v3461_v9  ;;  %v287_v45 = vmax.f32 %v255_v32, 0.0 }
  0xac   : > { %v1278_v16 = vsel %vm1274_vm13, %v1245_v58, %v1014_v15  ;;  %965 = vrot.lane.b32.xlu1 %v3422_v29, %s3102_s29  ;;  %v656_v7 = vshll.u32 %v3497_v62, 16  ;;  %v661_v15 = vshll.u32 %v3504_v6, 16  ;;  %v654_v49 = vshrl.u32 %v3497_v62, 16 }
  0xad   : > { %963 = vrot.lane.b32.xlu0 %v3392_v61, %s3102_s29  ;;  %2963 = vmatmul.mubr.msk.bf16.vlgmr.msra.gmra.mrb[0].mxu0 %vm1334_vm14, %v1278_v16  ;;  %v405_v18 = vshrl.u32 %v303_v8, 16  ;;  %v408_v42 = vshll.u32 %v303_v8, 16 }
  0xae   : > { %v3471_v17 = vpop.permute.xlu1 %825  ;;  %v658_v9 = vrot.slane %v656_v7, 1 }
  0xaf   : > { %v824_v21 = vpop.permute.xlu0 %823  ;;  %v1084_v20 = vsel %vm1076_vm7, %v1051_v13, %v3471_v17 }
  0xb0   : > { %997 = vrot.lane.b32.xlu1 %v640_v4, %s3105_s9  ;;  %v659_v38 = vor.u32 %v658_v9, %v654_v49  ;;  %v256_v9 = vld [vmem:[%s3169_s23 + $0xf0] sm:$0xff] }
  0xb1   : > { %995 = vrot.lane.b32.xlu0 %v628_v40, %s3105_s9 }
  0xb2   : > { %v858_v23 = vpop.permute.xlu1 %857 }
  0xb3   : > { %v856_v30 = vpop.permute.xlu0 %855  ;;  %v1117_v25 = vsel %vm1109_vm8, %v1084_v20, %v858_v23  ;;  %v663_v23 = vrot.slane %v661_v15, 1 }
  0xb4   : > { %807 = vrot.lane.b32.xlu1 %v628_v40, %s3100_s25  ;;  %v642_v40 = vshrl.u32 %v3478_v28, 16 }
  0xb5   : > { %1027 = vrot.lane.b32.xlu0 %v3442_v51, %s3106_s10 }
  0xb6   : > { %v890_v34 = vpop.permute.xlu1 %889  ;;  %v647_v54 = vor.u32 %v646_v41, %v642_v40 }
  0xb7   : > { %v888_v39 = vpop.permute.xlu0 %887 }
  0xb8   : > { %809 = vrot.lane.b32.xlu1 %v640_v4, %s3100_s25  ;;  %v652_v52 = vsel %vm496_vm4, %v647_v54, %v651_v55 }
  0xb9   : > { %1029 = vrot.lane.b32.xlu0 %v757_v35, %s3106_s10 }
  0xba   : > { %v922_v43 = vpop.permute.xlu1 %921 }
  0xbb   : > { %v920_v50 = vpop.permute.xlu0 %919 }
  0xbc   : > { %841 = vrot.lane.b32.xlu1 %v757_v35, %s3099_s24 }
  0xbd   : > { %839 = vrot.lane.b32.xlu0 %v3442_v51, %s3099_s24  ;;  %v1049_v51 = vsel %vm1043_vm6, %v3189_v44, %v3448_v59  ;;  %v3521_v59 = vsel %vm721_vm3, %v758_v0, %v759_v1 }
  0xbe   : > { %v954_v60 = vpop.permute.xlu1 %953  ;;  %v1082_v11 = vsel %vm1076_vm7, %v1049_v51, %v824_v21 }
  0xbf   : > { %v952_v63 = vpop.permute.xlu0 %951  ;;  %v1115_v14 = vsel %vm1109_vm8, %v1082_v11, %v856_v30 }
  0xc0   : > { %873 = vrot.lane.b32.xlu1 %v3478_v28, %s3101_s26  ;;  %v1148_v44 = vsel %vm1142_vm9, %v1115_v14, %v888_v39  ;;  %v407_v39 = vrot.slane %v405_v18, 7  ;;  %v257_v18 = vld [vmem:[%s3169_s23 + $0xf8] sm:$0xff] }
  0xc1   : > { %871 = vrot.lane.b32.xlu0 %v3422_v29, %s3101_s26  ;;  %v1181_v16 = vsel %vm1175_vm10, %v1148_v44, %v920_v50 }
  0xc2   : > { %v986_v12 = vpop.permute.xlu1 %985  ;;  %v1214_v21 = vsel %vm1208_vm11, %v1181_v16, %v952_v63  ;;  %v410_v54 = vor.u32 %v408_v42, %v407_v39  ;;  %v762_v63 = vrot.slane %v3504_v6, 1  ;;  %v493_v6 = vsel %vm3145_vm2, %v407_v39, 0 }
  0xc3   : > { %v984_v58 = vpop.permute.xlu0 %983  ;;  %v673_v44 = vshll.u32 %v493_v6, 16 }
  0xc4   : > { %905 = vrot.lane.b32.xlu1 %v652_v52, %s3104_s8  ;;  %v1247_v46 = vsel %vm1241_vm12, %v1214_v21, %v984_v58  ;;  %v3562_v0 = vsel %vm3145_vm2, 0, %v410_v54 }
  0xc5   : > { %903 = vrot.lane.b32.xlu0 %v640_v4, %s3104_s8  ;;  %v1150_v4 = vsel %vm1142_vm9, %v1117_v25, %v890_v34  ;;  %v286_v34 = vmax.f32 %v254_v31, 0.0  ;;  %v668_v7 = vshll.u32 %v3562_v0, 16  ;;  %v675_v21 = vrot.slane %v673_v44, 1 }
  0xc6   : > { %v3530_v24 = vpop.permute.xlu1 %795  ;;  %v1183_v17 = vsel %vm1175_vm10, %v1150_v4, %v922_v43  ;;  %v289_v31 = vmax.f32 %v257_v18, 0.0  ;;  %v764_v4 = vrot.slane %v3562_v0, 1 }
  0xc7   : > { %v1016_v30 = vpop.permute.xlu0 %1015  ;;  %v1216_v40 = vsel %vm1208_vm11, %v1183_v17, %v954_v60  ;;  %v304_v55 = vpack.c.bf16 %v287_v45, %v286_v34  ;;  %v761_v60 = vrot.slane %v3497_v62, 1  ;;  %v670_v58 = vrot.slane %v668_v7, 1 }
  0xc8   : > { %v1280_v37 = vsel %vm1274_vm13, %v1247_v46, %v1016_v30  ;;  %937 = vrot.lane.b32.xlu1 %v3521_v59, %s3103_s7  ;;  %v1249_v47 = vsel %vm1241_vm12, %v1216_v40, %v986_v12  ;;  %v288_v30 = vmax.f32 %v256_v9, 0.0 }
  0xc9   : > { %935 = vrot.lane.b32.xlu0 %v757_v35, %s3103_s7  ;;  %2966 = vmatprep.mubr.msk.bf16.mxu0 %vm1334_vm14, %v1280_v37  ;;  %v664_v35 = vsel %vm496_vm4, %v659_v38, %v663_v23  ;;  %v412_v1 = vshrl.u32 %v304_v55, 16  ;;  %v763_v11 = vsel %vm721_vm3, %v761_v60, %v762_v63  ;;  %v415_v13 = vshll.u32 %v304_v55, 16 }
  0xca   : > { %v3544_v41 = vpop.permute.xlu1 %797  ;;  %v765_v37 = vrot.slane %v493_v6, 1  ;;  %v305_v42 = vpack.c.bf16 %v289_v31, %v288_v30 }
  0xcb   : > { %v1018_v48 = vpop.permute.xlu0 %1017  ;;  %v414_v12 = vrot.slane %v412_v1, 7  ;;  %v1055_v34 = vsel %vm1043_vm6, %v3266_v53, %v3544_v41 }
  0xcc   : > { %v1282_v50 = vsel %vm1274_vm13, %v1249_v47, %v1018_v48  ;;  %969 = vrot.lane.b32.xlu1 %v3497_v62, %s3102_s29  ;;  %v766_v47 = vsel %vm721_vm3, %v764_v4, %v765_v37  ;;  %v419_v60 = vshrl.u32 %v305_v42, 16 }
  0xcd   : > { %967 = vrot.lane.b32.xlu0 %v3478_v28, %s3102_s29  ;;  %2967 = vmatmul.mubr.msk.bf16.gmra.mrb[4].mxu0 %vm1334_vm14, %v1282_v50  ;;  %v417_v16 = vor.u32 %v415_v13, %v414_v12  ;;  %v494_v40 = vsel %vm3145_vm2, %v414_v12, 0 }
  0xce   : > { %v3554_v43 = vpop.permute.xlu1 %829  ;;  %v685_v55 = vshll.u32 %v494_v40, 16 }
  0xcf   : > { %v828_v56 = vpop.permute.xlu0 %827  ;;  %v3581_v46 = vsel %vm3145_vm2, 0, %v417_v16  ;;  %v1088_v53 = vsel %vm1076_vm7, %v1055_v34, %v3554_v43 }
  0xd0   : > { %1001 = vrot.lane.b32.xlu1 %v664_v35, %s3105_s9  ;;  %v680_v38 = vshll.u32 %v3581_v46, 16  ;;  %v678_v50 = vshrl.u32 %v3581_v46, 16  ;;  %v687_v12 = vrot.slane %v685_v55, 1  ;;  %v767_v18 = vrot.slane %v3581_v46, 1 }
  0xd1   : > { %999 = vrot.lane.b32.xlu0 %v652_v52, %s3105_s9 }
  0xd2   : > { %v862_v57 = vpop.permute.xlu1 %861  ;;  %v682_v54 = vrot.slane %v680_v38, 1 }
  0xd3   : > { %v860_v51 = vpop.permute.xlu0 %859  ;;  %v1121_v63 = vsel %vm1109_vm8, %v1088_v53, %v862_v57 }
  0xd4   : > { %811 = vrot.lane.b32.xlu1 %v652_v52, %s3100_s25  ;;  %v666_v52 = vshrl.u32 %v3562_v0, 16  ;;  %v683_v43 = vor.u32 %v682_v54, %v678_v50 }
  0xd5   : > { %1031 = vrot.lane.b32.xlu0 %v3521_v59, %s3106_s10 }
  0xd6   : > { %v894_v8 = vpop.permute.xlu1 %893  ;;  %v671_v20 = vor.u32 %v670_v58, %v666_v52  ;;  %v422_v52 = vshll.u32 %v305_v42, 16 }
  0xd7   : > { %v892_v14 = vpop.permute.xlu0 %891  ;;  %v1154_v7 = vsel %vm1142_vm9, %v1121_v63, %v894_v8 }
  0xd8   : > { %813 = vrot.lane.b32.xlu1 %v664_v35, %s3100_s25  ;;  %v676_v17 = vsel %vm496_vm4, %v671_v20, %v675_v21  ;;  %v768_v20 = vrot.slane %v494_v40, 1 }
  0xd9   : > { %1033 = vrot.lane.b32.xlu0 %v763_v11, %s3106_s10 }
  0xda   : > { %v926_v15 = vpop.permute.xlu1 %925 }
  0xdb   : > { %v924_v49 = vpop.permute.xlu0 %923  ;;  %v1187_v6 = vsel %vm1175_vm10, %v1154_v7, %v926_v15 }
  0xdc   : > { %845 = vrot.lane.b32.xlu1 %v763_v11, %s3099_s24 }
  0xdd   : > { %843 = vrot.lane.b32.xlu0 %v3521_v59, %s3099_s24  ;;  %v1053_v59 = vsel %vm1043_vm6, %v3244_v33, %v3530_v24 }
  0xde   : > { %v958_v25 = vpop.permute.xlu1 %957  ;;  %v1086_v23 = vsel %vm1076_vm7, %v1053_v59, %v828_v56 }
  0xdf   : > { %v956_v32 = vpop.permute.xlu0 %955  ;;  %v1119_v33 = vsel %vm1109_vm8, %v1086_v23, %v860_v51  ;;  %v1220_v13 = vsel %vm1208_vm11, %v1187_v6, %v958_v25 }
  0xe0   : > { %877 = vrot.lane.b32.xlu1 %v3562_v0, %s3101_s26  ;;  %v1152_v45 = vsel %vm1142_vm9, %v1119_v33, %v892_v14  ;;  %v421_v14 = vrot.slane %v419_v60, 7 }
  0xe1   : > { %875 = vrot.lane.b32.xlu0 %v3497_v62, %s3101_s26  ;;  %v1185_v48 = vsel %vm1175_vm10, %v1152_v45, %v924_v49 }
  0xe2   : > { %v990_v39 = vpop.permute.xlu1 %989  ;;  %v1218_v41 = vsel %vm1208_vm11, %v1185_v48, %v956_v32  ;;  %v424_v16 = vor.u32 %v422_v52, %v421_v14  ;;  %v769_v32 = vsel %vm721_vm3, %v767_v18, %v768_v20  ;;  %v495_v4 = vsel %vm3145_vm2, %v421_v14, 0 }
  0xe3   : > { %v988_v24 = vpop.permute.xlu0 %987  ;;  %v1253_v58 = vsel %vm1241_vm12, %v1220_v13, %v990_v39  ;;  %v778_v23 = vshll.u32 %v495_v4, 16  ;;  %v785_v50 = vrot.slane %v495_v4, 1 }
  0xe4   : > { %909 = vrot.lane.b32.xlu1 %v676_v17, %s3104_s8  ;;  %v1251_v1 = vsel %vm1241_vm12, %v1218_v41, %v988_v24  ;;  %v478_v21 = vsel %vm3145_vm2, 0, %v424_v16 }
  0xe5   : > { %907 = vrot.lane.b32.xlu0 %v664_v35, %s3104_s8  ;;  %v773_v30 = vshll.u32 %v478_v21, 16  ;;  %v771_v59 = vshrl.u32 %v478_v21, 16  ;;  %v780_v42 = vrot.slane %v778_v23, 1  ;;  %v784_v48 = vrot.slane %v478_v21, 1 }
  0xe6   : > { %v800_v56 = vpop.permute.xlu1 %799 }
  0xe7   : > { %v1020_v51 = vpop.permute.xlu0 %1019  ;;  %v775_v38 = vrot.slane %v773_v30, 1  ;;  %v1057_v24 = vsel %vm1043_vm6, %v3295_v19, %v800_v56  ;;  %v786_v56 = vsel %vm721_vm3, %v784_v48, %v785_v50 }
  0xe8   : > { %v1284_v35 = vsel %vm1274_vm13, %v1251_v1, %v1020_v51  ;;  %941 = vrot.lane.b32.xlu1 %v766_v47, %s3103_s7 }
  0xe9   : > { %939 = vrot.lane.b32.xlu0 %v763_v11, %s3103_s7  ;;  %2970 = vmatprep.mubr.msk.bf16.mxu0 %vm1334_vm14, %v1284_v35  ;;  %v688_v11 = vsel %vm496_vm4, %v683_v43, %v687_v12 }
  0xea   : > { %v802_v57 = vpop.permute.xlu1 %801 }
  0xeb   : > { %v1022_v8 = vpop.permute.xlu0 %1021 }
  0xec   : > { %v1286_v44 = vsel %vm1274_vm13, %v1253_v58, %v1022_v8  ;;  %973 = vrot.lane.b32.xlu1 %v3581_v46, %s3102_s29 }
  0xed   : > { %971 = vrot.lane.b32.xlu0 %v3562_v0, %s3102_s29  ;;  %2971 = vmatmul.mubr.msk.bf16.gmra.mrb[8].mxu0 %vm1334_vm14, %v1286_v44 }
  0xee   : > { %v834_v15 = vpop.permute.xlu1 %833 }
  0xef   : > { %v832_v49 = vpop.permute.xlu0 %831 }
  0xf0   : > { %1005 = vrot.lane.b32.xlu1 %v688_v11, %s3105_s9  ;;  %v1090_v54 = vsel %vm1076_vm7, %v1057_v24, %v832_v49 }
  0xf1   : > { %1003 = vrot.lane.b32.xlu0 %v676_v17, %s3105_s9 }
  0xf2   : > { %v866_v9 = vpop.permute.xlu1 %865 }
  0xf3   : > { %v864_v25 = vpop.permute.xlu0 %863 }
  0xf4   : > { %815 = vrot.lane.b32.xlu1 %v676_v17, %s3100_s25  ;;  %v776_v17 = vor.u32 %v775_v38, %v771_v59  ;;  %v1123_v53 = vsel %vm1109_vm8, %v1090_v54, %v864_v25 }
  0xf5   : > { %1035 = vrot.lane.b32.xlu0 %v766_v47, %s3106_s10 }
  0xf6   : > { %v898_v31 = vpop.permute.xlu1 %897  ;;  %v781_v45 = vsel %vm496_vm4, %v776_v17, %v780_v42 }
  0xf7   : > { %v896_v37 = vpop.permute.xlu0 %895 }
  0xf8   : > { %817 = vrot.lane.b32.xlu1 %v688_v11, %s3100_s25  ;;  %v1156_v60 = vsel %vm1142_vm9, %v1123_v53, %v896_v37 }
  0xf9   : > { %1037 = vrot.lane.b32.xlu0 %v769_v32, %s3106_s10 }
  0xfa   : > { %v930_v39 = vpop.permute.xlu1 %929 }
  0xfb   : > { %v928_v40 = vpop.permute.xlu0 %927 }
  0xfc   : > { %849 = vrot.lane.b32.xlu1 %v769_v32, %s3099_s24  ;;  %v1189_v19 = vsel %vm1175_vm10, %v1156_v60, %v928_v40 }
  0xfd   : > { %847 = vrot.lane.b32.xlu0 %v766_v47, %s3099_s24  ;;  %v1059_v47 = vsel %vm1043_vm6, %v3312_v36, %v802_v57 }
  0xfe   : > { %v962_v34 = vpop.permute.xlu1 %961  ;;  %v1092_v63 = vsel %vm1076_vm7, %v1059_v47, %v834_v15 }
  0xff   : > { %v960_v33 = vpop.permute.xlu0 %959  ;;  %v1125_v36 = vsel %vm1109_vm8, %v1092_v63, %v866_v9 }
 0x100   : > { %881 = vrot.lane.b32.xlu1 %v478_v21, %s3101_s26  ;;  %v1222_v1 = vsel %vm1208_vm11, %v1189_v19, %v960_v33  ;;  %v1158_v6 = vsel %vm1142_vm9, %v1125_v36, %v898_v31 }
 0x101   : > { %879 = vrot.lane.b32.xlu0 %v3581_v46, %s3101_s26  ;;  %v1191_v12 = vsel %vm1175_vm10, %v1158_v6, %v930_v39 }
 0x102   : > { %v994_v55 = vpop.permute.xlu1 %993  ;;  %v1224_v13 = vsel %vm1208_vm11, %v1191_v12, %v962_v34 }
 0x103   : > { %v992_v41 = vpop.permute.xlu0 %991  ;;  %v1257_v14 = vsel %vm1241_vm12, %v1224_v13, %v994_v55 }
 0x104   : > { %913 = vrot.lane.b32.xlu1 %v781_v45, %s3104_s8  ;;  %v1255_v7 = vsel %vm1241_vm12, %v1222_v1, %v992_v41 }
 0x105   : > { %911 = vrot.lane.b32.xlu0 %v688_v11, %s3104_s8 }
 0x106   : > { %v804_v51 = vpop.permute.xlu1 %803 }
 0x107   : > { %v1024_v35 = vpop.permute.xlu0 %1023 }
 0x108   : > { %v1288_v43 = vsel %vm1274_vm13, %v1255_v7, %v1024_v35  ;;  %945 = vrot.lane.b32.xlu1 %v786_v56, %s3103_s7 }
 0x109   : > { %943 = vrot.lane.b32.xlu0 %v769_v32, %s3103_s7  ;;  %2974 = vmatprep.mubr.msk.bf16.mxu0 %vm1334_vm14, %v1288_v43 }
 0x10a   : > { %v806_v57 = vpop.permute.xlu1 %805 }
 0x10b   : > { %v1026_v52 = vpop.permute.xlu0 %1025  ;;  %v1063_v30 = vsel %vm1043_vm6, %v3358_v22, %v806_v57 }
 0x10c   : > { %v1290_v58 = vsel %vm1274_vm13, %v1257_v14, %v1026_v52  ;;  %977 = vrot.lane.b32.xlu1 %v3151_v3, %s3102_s29 }
 0x10d   : > { %975 = vrot.lane.b32.xlu0 %v478_v21, %s3102_s29  ;;  %2975 = vmatmul.mubr.msk.bf16.gmra.mrb[12].mxu0 %vm1334_vm14, %v1290_v58  ;;  %v1061_v21 = vsel %vm1043_vm6, %v3341_v5, %v804_v51 }
 0x10e   : > { %v838_v8 = vpop.permute.xlu1 %837 }
 0x10f   : > { %v836_v44 = vpop.permute.xlu0 %835  ;;  %v1096_v37 = vsel %vm1076_vm7, %v1063_v30, %v838_v8 }
 0x110   : > { %1009 = vrot.lane.b32.xlu1 %v3180_v26, %s3105_s9  ;;  %v1094_v26 = vsel %vm1076_vm7, %v1061_v21, %v836_v44 }
 0x111   : > { %1007 = vrot.lane.b32.xlu0 %v781_v45, %s3105_s9 }
 0x112   : > { %v870_v11 = vpop.permute.xlu1 %869 }
 0x113   : > { %v868_v15 = vpop.permute.xlu0 %867  ;;  %v1129_v5 = vsel %vm1109_vm8, %v1096_v37, %v870_v11 }
 0x114   : > { %1041 = vrot.lane.b32.xlu1 %v3162_v10, %s3106_s10  ;;  %v1127_v31 = vsel %vm1109_vm8, %v1094_v26, %v868_v15 }
 0x115   : > { %1039 = vrot.lane.b32.xlu0 %v786_v56, %s3106_s10 }
 0x116   : > { %v902_v16 = vpop.permute.xlu1 %901 }
 0x117   : > { %v900_v3 = vpop.permute.xlu0 %899  ;;  %v1162_v40 = vsel %vm1142_vm9, %v1129_v5, %v902_v16 }
 0x118   : > { %v1160_v32 = vsel %vm1142_vm9, %v1127_v31, %v900_v3 }
 0x11a   : > { %v934_v49 = vpop.permute.xlu1 %933 }
 0x11b   : > { %v932_v9 = vpop.permute.xlu0 %931  ;;  %v1195_v17 = vsel %vm1175_vm10, %v1162_v40, %v934_v49 }
 0x11c   : > { %v1193_v4 = vsel %vm1175_vm10, %v1160_v32, %v932_v9 }
 0x11e   : > { %v966_v18 = vpop.permute.xlu1 %965 }
 0x11f   : > { %v964_v20 = vpop.permute.xlu0 %963  ;;  %v1228_v42 = vsel %vm1208_vm11, %v1195_v17, %v966_v18 }
 0x120   : > { %v1226_v59 = vsel %vm1208_vm11, %v1193_v4, %v964_v20 }
 0x122   : > { %v998_v25 = vpop.permute.xlu1 %997 }
 0x123   : > { %v996_v10 = vpop.permute.xlu0 %995  ;;  %v1261_v33 = vsel %vm1241_vm12, %v1228_v42, %v998_v25 }
 0x124   : > { %v1259_v23 = vsel %vm1241_vm12, %v1226_v59, %v996_v10 }
 0x126   : > { %v808_v38 = vpop.permute.xlu1 %807 }
 0x127   : > { %v1028_v39 = vpop.permute.xlu0 %1027  ;;  %v1065_v63 = vsel %vm1043_vm6, %v3392_v61, %v808_v38 }
 0x128   : > { %v1292_v22 = vsel %vm1274_vm13, %v1259_v23, %v1028_v39 }
 0x129   : > { %2978 = vmatprep.mubr.msk.bf16.mxu0 %vm1334_vm14, %v1292_v22 }
 0x12a   : > { %v810_v34 = vpop.permute.xlu1 %809 }
 0x12b   : > { %v1030_v24 = vpop.permute.xlu0 %1029  ;;  %v1067_v36 = vsel %vm1043_vm6, %v3422_v29, %v810_v34 }
 0x12c   : > { %v1294_v45 = vsel %vm1274_vm13, %v1261_v33, %v1030_v24 }
 0x12d   : > { %2979 = vmatmul.mubr.msk.bf16.gmra.mrb[16].mxu0 %vm1334_vm14, %v1294_v45 }
 0x12e   : > { %v842_v48 = vpop.permute.xlu1 %841 }
 0x12f   : > { %v840_v50 = vpop.permute.xlu0 %839  ;;  %v1100_v12 = vsel %vm1076_vm7, %v1067_v36, %v842_v48 }
 0x130   : > { %v1098_v1 = vsel %vm1076_vm7, %v1065_v63, %v840_v50 }
 0x132   : > { %v874_v54 = vpop.permute.xlu1 %873 }
 0x133   : > { %v872_v55 = vpop.permute.xlu0 %871  ;;  %v1133_v61 = vsel %vm1109_vm8, %v1100_v12, %v874_v54 }
 0x134   : > { %v1131_v7 = vsel %vm1109_vm8, %v1098_v1, %v872_v55 }
 0x136   : > { %v906_v47 = vpop.permute.xlu1 %905 }
 0x137   : > { %v904_v53 = vpop.permute.xlu0 %903  ;;  %v1166_v58 = vsel %vm1142_vm9, %v1133_v61, %v906_v47 }
 0x138   : > { %v1164_v6 = vsel %vm1142_vm9, %v1131_v7, %v904_v53  ;;  %v3745_v7 = vld [vmem:[%s4542_s2] ss:$0 sm:$0xff] }
 0x13a   : > { %v938_v41 = vpop.permute.xlu1 %937 }
 0x13b   : > { %v936_v60 = vpop.permute.xlu0 %935  ;;  %v1199_v8 = vsel %vm1175_vm10, %v1166_v58, %v938_v41 }
 0x13c   : > { %v1197_v43 = vsel %vm1175_vm10, %v1164_v6, %v936_v60 }
 0x13e   : > { %v970_v19 = vpop.permute.xlu1 %969 }
 0x13f   : > { %v968_v56 = vpop.permute.xlu0 %967  ;;  %v1232_v44 = vsel %vm1208_vm11, %v1199_v8, %v970_v19 }
 0x140   : > { %v1230_v13 = vsel %vm1208_vm11, %v1197_v43, %v968_v56 }
 0x142   : > { %v1002_v51 = vpop.permute.xlu1 %1001 }
 0x143   : > { %v1000_v35 = vpop.permute.xlu0 %999  ;;  %v1265_v15 = vsel %vm1241_vm12, %v1232_v44, %v1002_v51 }
 0x144   : > { %v1263_v14 = vsel %vm1241_vm12, %v1230_v13, %v1000_v35 }
 0x146   : > { %v812_v57 = vpop.permute.xlu1 %811 }
 0x147   : > { %v1032_v52 = vpop.permute.xlu0 %1031  ;;  %v1069_v32 = vsel %vm1043_vm6, %v3478_v28, %v812_v57 }
 0x148   : > { %v1296_v29 = vsel %vm1274_vm13, %v1263_v14, %v1032_v52 }
 0x149   : > { %2982 = vmatprep.mubr.msk.bf16.mxu0 %vm1334_vm14, %v1296_v29 }
 0x14a   : > { %v814_v11 = vpop.permute.xlu1 %813 }
 0x14b   : > { %v1034_v16 = vpop.permute.xlu0 %1033  ;;  %v1071_v59 = vsel %vm1043_vm6, %v3497_v62, %v814_v11 }
 0x14c   : > { %v1298_v3 = vsel %vm1274_vm13, %v1265_v15, %v1034_v16 }
 0x14d   : > { %2983 = vmatmul.mubr.msk.bf16.gmra.mrb[20].mxu0 %vm1334_vm14, %v1298_v3 }
 0x14e   : > { %v846_v49 = vpop.permute.xlu1 %845 }
 0x14f   : > { %v844_v9 = vpop.permute.xlu0 %843  ;;  %v1104_v40 = vsel %vm1076_vm7, %v1071_v59, %v846_v49 }
 0x150   : > { %v1102_v4 = vsel %vm1076_vm7, %v1069_v32, %v844_v9 }
 0x152   : > { %v878_v18 = vpop.permute.xlu1 %877 }
 0x153   : > { %v876_v20 = vpop.permute.xlu0 %875  ;;  %v1137_v28 = vsel %vm1109_vm8, %v1104_v40, %v878_v18 }
 0x154   : > { %v1135_v38 = vsel %vm1109_vm8, %v1102_v4, %v876_v20 }
 0x156   : > { %v910_v21 = vpop.permute.xlu1 %909 }
 0x157   : > { %v908_v26 = vpop.permute.xlu0 %907  ;;  %v1170_v33 = vsel %vm1142_vm9, %v1137_v28, %v910_v21 }
 0x158   : > { %v1168_v23 = vsel %vm1142_vm9, %v1135_v38, %v908_v26 }
 0x15a   : > { %v942_v25 = vpop.permute.xlu1 %941 }
 0x15b   : > { %v940_v30 = vpop.permute.xlu0 %939  ;;  %v1203_v24 = vsel %vm1175_vm10, %v1170_v33, %v942_v25 }
 0x15c   : > { %v1201_v39 = vsel %vm1175_vm10, %v1168_v23, %v940_v30 }
 0x15e   : > { %v974_v31 = vpop.permute.xlu1 %973 }
 0x15f   : > { %v972_v10 = vpop.permute.xlu0 %971  ;;  %v1236_v45 = vsel %vm1208_vm11, %v1203_v24, %v974_v31 }
 0x160   : > { %v1234_v22 = vsel %vm1208_vm11, %v1201_v39, %v972_v10 }
 0x162   : > { %v1006_v37 = vpop.permute.xlu1 %1005 }
 0x163   : > { %v1004_v5 = vpop.permute.xlu0 %1003  ;;  %v1269_v50 = vsel %vm1241_vm12, %v1236_v45, %v1006_v37 }
 0x164   : > { %v1267_v42 = vsel %vm1241_vm12, %v1234_v22, %v1004_v5 }
 0x166   : > { %v816_v17 = vpop.permute.xlu1 %815 }
 0x167   : > { %v1036_v34 = vpop.permute.xlu0 %1035  ;;  %v1073_v43 = vsel %vm1043_vm6, %v3562_v0, %v816_v17 }
 0x168   : > { %v1300_v62 = vsel %vm1274_vm13, %v1267_v42, %v1036_v34 }
 0x169   : > { %2986 = vmatprep.mubr.msk.bf16.mxu0 %vm1334_vm14, %v1300_v62 }
 0x16a   : > { %v818_v48 = vpop.permute.xlu1 %817 }
 0x16b   : > { %v1038_v54 = vpop.permute.xlu0 %1037  ;;  %v1075_v51 = vsel %vm1043_vm6, %v3581_v46, %v818_v48 }
 0x16c   : > { %v1302_v55 = vsel %vm1274_vm13, %v1269_v50, %v1038_v54 }
 0x16d   : > { %2987 = vmatmul.mubr.msk.bf16.gmra.mrb[24].mxu0 %vm1334_vm14, %v1302_v55 }
 0x16e   : > { %v850_v47 = vpop.permute.xlu1 %849 }
 0x16f   : > { %v848_v53 = vpop.permute.xlu0 %847  ;;  %v1108_v12 = vsel %vm1076_vm7, %v1075_v51, %v850_v47 }
 0x170   : > { %v1106_v61 = vsel %vm1076_vm7, %v1073_v43, %v848_v53 }
 0x172   : > { %v882_v41 = vpop.permute.xlu1 %881 }
 0x173   : > { %v880_v60 = vpop.permute.xlu0 %879  ;;  %v1141_v46 = vsel %vm1109_vm8, %v1108_v12, %v882_v41 }
 0x174   : > { %v1139_v29 = vsel %vm1109_vm8, %v1106_v61, %v880_v60 }
 0x176   : > { %v914_v19 = vpop.permute.xlu1 %913 }
 0x177   : > { %v912_v56 = vpop.permute.xlu0 %911  ;;  %v1174_v8 = vsel %vm1142_vm9, %v1141_v46, %v914_v19 }
 0x178   : > { %v1172_v15 = vsel %vm1142_vm9, %v1139_v29, %v912_v56 }
 0x17a   : > { %v946_v63 = vpop.permute.xlu1 %945 }
 0x17b   : > { %v944_v1 = vpop.permute.xlu0 %943  ;;  %v1207_v16 = vsel %vm1175_vm10, %v1174_v8, %v946_v63 }
 0x17c   : > { %v1205_v49 = vsel %vm1175_vm10, %v1172_v15, %v944_v1 }
 0x17e   : > { %v3740_v36 = vpop.permute.xlu1 %977 }
 0x17f   : > { %v976_v35 = vpop.permute.xlu0 %975  ;;  %v1240_v9 = vsel %vm1208_vm11, %v1207_v16, %v3740_v36 }
 0x180   : > { %v2964_v6 = vpop.f32.mrb[0].mxu0  ;;  %v1238_v21 = vsel %vm1208_vm11, %v1205_v49, %v976_v35 }
 0x181   : > { %v1414_v13 = vadd.f32 %v2964_v6, %v3745_v7  ;;  %v1405_v57 = vpop.f32.mrb[1].mxu0 }
 0x182   : > { %v1406_v14 = vadd.f32 %v3745_v7, %v1405_v57  ;;  %v2965_v52 = vpop.f32.mrb[2].mxu0  ;;  %v3754_v58 = vpop.permute.xlu1 %1009 }
 0x183   : > { %v1417_v0 = vadd.f32 %v2965_v52, %v3745_v7  ;;  %v1408_v44 = vpop.f32.mrb[3].mxu0  ;;  %v1008_v11 = vpop.permute.xlu0 %1007  ;;  %v1534_v18 = vmax.f32 %v1414_v13, 0.0  ;;  %v1273_v25 = vsel %vm1241_vm12, %v1240_v9, %v3754_v58 }
 0x184   : > { %v1409_v3 = vadd.f32 %v3745_v7, %v1408_v44  ;;  %v1532_v26 = vmax.f32 %v1406_v14, 0.0  ;;  %v1271_v32 = vsel %vm1241_vm12, %v1238_v21, %v1008_v11 }
 0x185   : > { %v1535_v20 = vmax.f32 %v1417_v0, 0.0 }
 0x186   : > { %v1533_v30 = vmax.f32 %v1409_v3, 0.0  ;;  %v3768_v31 = vpop.permute.xlu1 %1041 }
 0x187   : > { %v1565_v10 = vpack.c.bf16 %v1535_v20, %v1534_v18  ;;  %v1040_v4 = vpop.permute.xlu0 %1039  ;;  %v1306_v37 = vsel %vm1274_vm13, %v1273_v25, %v3768_v31 }
 0x188   : > { %v1564_v59 = vpack.c.bf16 %v1533_v30, %v1532_v26  ;;  %v1304_v38 = vsel %vm1274_vm13, %v1271_v32, %v1040_v4 }
 0x189   : > { %v1588_v5 = vshrl.u32 %v1565_v10, 16  ;;  %2990 = vmatprep.mubr.msk.bf16.mxu0 %vm1334_vm14, %v1304_v38  ;;  %v1591_v40 = vshll.u32 %v1565_v10, 16 }
 0x18a   : > { %v1581_v23 = vshrl.u32 %v1564_v59, 16  ;;  %2991 = vmatmul.mubr.msk.bf16.gmra.mrb[28].mxu0 %vm1334_vm14, %v1306_v37  ;;  %v1584_v17 = vshll.u32 %v1564_v59, 16  ;;  %v3054_v37 = vld [vmem:[%s4543_s3] sm:$0xff]  }
 0x18b   : > { %v1590_v39 = vrot.slane %v1588_v5, 7  ;;  %2994 = vmatprep.subr.bf16.mxu1 %v3054_v37 }
 0x18c   : > { %v1583_v22 = vrot.slane %v1581_v23, 7  ;;  %2995 = vmatpush3.bf16.msra.mxu1 %v3054_v37 }
 0x18d   : > { %v1593_v28 = vor.u32 %v1591_v40, %v1590_v39  ;;  %v1741_v42 = vsel %vm3145_vm2, %v1590_v39, 0  ;;  %v3055_v39 = vld [vmem:[%s4543_s3 + $0x8] sm:$0xff]  }
 0x18e   : > { %v1586_v34 = vor.u32 %v1584_v17, %v1583_v22  ;;  %v1970_v24 = vrot.slane %v1741_v42, 1  ;;  %v1740_v50 = vsel %vm3145_vm2, %v1583_v22, 0  ;;  %v1776_v60 = vshll.u32 %v1741_v42, 16  ;;  %2996 = vmatprep.subr.bf16.mxu1 %v3055_v39 }
 0x18f   : > { %v3780_v33 = vsel %vm3145_vm2, 0, %v1593_v28  ;;  %v1967_v53 = vrot.slane %v1740_v50, 1  ;;  %v1764_v57 = vshll.u32 %v1740_v50, 16 }
 0x190   : > { %2090 = vrot.lane.b32.xlu1 %v3780_v33, %s3101_s26  ;;  %2184 = vrot.lane.b32.xlu0 %v3780_v33, %s3102_s29  ;;  %v1969_v62 = vrot.slane %v3780_v33, 1  ;;  %v3789_v45 = vsel %vm3145_vm2, 0, %v1586_v34  ;;  %v1771_v48 = vshll.u32 %v3780_v33, 16  ;;  %v1769_v41 = vshrl.u32 %v3780_v33, 16 }
 0x191   : > { %v1966_v55 = vrot.slane %v3789_v45, 1  ;;  %v1778_v63 = vrot.slane %v1776_v60, 1  ;;  %v1759_v51 = vshll.u32 %v3789_v45, 16  ;;  %v1757_v13 = vshrl.u32 %v3789_v45, 16  ;;  %2997 = vmatpush3.bf16.msra.mxu1 %v3055_v39 }
 0x192   : > { %v1971_v54 = vsel %vm721_vm3, %v1969_v62, %v1970_v24  ;;  %v1773_v47 = vrot.slane %v1771_v48, 1  ;;  %v1766_v11 = vrot.slane %v1764_v57, 1  ;;  %v3056_v34 = vld [vmem:[%s4543_s3 + $0x10] ss:$0 sps:$4 sm:$0x33]  }
 0x193   : > { %v1968_v19 = vsel %vm721_vm3, %v1966_v55, %v1967_v53  ;;  %v1761_v35 = vrot.slane %v1759_v51, 1  ;;  %3033 = vmatprep.subr.msk.bf16.mxu1 %vm1367_vm5, %v3056_v34  ;;  %v2583_v50 = vsel %vm1367_vm5, %v3056_v34, 0 }
 0x194   : > { %2154 = vrot.lane.b32.xlu1 %v1971_v54, %s3103_s7  ;;  %2088 = vrot.lane.b32.xlu0 %v3789_v45, %s3101_s26  ;;  %v1774_v56 = vor.u32 %v1773_v47, %v1769_v41 }
 0x195   : > { %v1762_v29 = vor.u32 %v1761_v35, %v1757_v13  ;;  %2999 = vmatpush3.bf16.msra.mxu1 %v2583_v50 }
 0x196   : > { %v1779_v1 = vsel %vm496_vm4, %v1774_v56, %v1778_v63 }
 0x197   : > { %v1767_v49 = vsel %vm496_vm4, %v1762_v29, %v1766_v11 }
 0x198   : > { %2058 = vrot.lane.b32.xlu1 %v1968_v19, %s3099_s24  ;;  %2244 = vrot.lane.b32.xlu0 %v1971_v54, %s3106_s10 }
 0x19c   : > { %2122 = vrot.lane.b32.xlu1 %v1779_v1, %s3104_s8  ;;  %2060 = vrot.lane.b32.xlu0 %v1971_v54, %s3099_s24 }
 0x1a0   : > { %2030 = vrot.lane.b32.xlu1 %v1779_v1, %s3100_s25  ;;  %v2968_v6 = vpop.f32.mrb[4].mxu0  ;;  %2152 = vrot.lane.b32.xlu0 %v1968_v19, %s3103_s7 }
 0x1a1   : > { %v1430_v43 = vadd.f32 %v2968_v6, %v3745_v7  ;;  %v1421_v12 = vpop.f32.mrb[5].mxu0 }
 0x1a2   : > { %v1422_v61 = vadd.f32 %v3745_v7, %v1421_v12  ;;  %v2969_v46 = vpop.f32.mrb[6].mxu0 }
 0x1a3   : > { %v1433_v14 = vadd.f32 %v2969_v46, %v3745_v7  ;;  %v1424_v52 = vpop.f32.mrb[7].mxu0  ;;  %v1538_v0 = vmax.f32 %v1430_v43, 0.0 }
 0x1a4   : > { %v1425_v8 = vadd.f32 %v3745_v7, %v1424_v52  ;;  %2214 = vrot.lane.b32.xlu0 %v1779_v1, %s3105_s9  ;;  %v1536_v15 = vmax.f32 %v1422_v61, 0.0 }
 0x1a5   : > { %v1539_v44 = vmax.f32 %v1433_v14, 0.0 }
 0x1a6   : > { %v1537_v16 = vmax.f32 %v1425_v8, 0.0 }
 0x1a7   : > { %v1567_v3 = vpack.c.bf16 %v1539_v44, %v1538_v0 }
 0x1a8   : > { %v1566_v9 = vpack.c.bf16 %v1537_v16, %v1536_v15  ;;  %2028 = vrot.lane.b32.xlu0 %v1767_v49, %s3100_s25 }
 0x1a9   : > { %v1602_v18 = vshrl.u32 %v1567_v3, 16  ;;  %v1605_v26 = vshll.u32 %v1567_v3, 16 }
 0x1aa   : > { %v1595_v20 = vshrl.u32 %v1566_v9, 16  ;;  %v1598_v10 = vshll.u32 %v1566_v9, 16 }
 0x1ab   : > { %v1604_v21 = vrot.slane %v1602_v18, 7 }
 0x1ac   : > { %v1597_v25 = vrot.slane %v1595_v20, 7  ;;  %2120 = vrot.lane.b32.xlu0 %v1767_v49, %s3104_s8 }
 0x1ad   : > { %v1607_v30 = vor.u32 %v1605_v26, %v1604_v21  ;;  %v1743_v59 = vsel %vm3145_vm2, %v1604_v21, 0 }
 0x1ae   : > { %v1600_v32 = vor.u32 %v1598_v10, %v1597_v25  ;;  %v1976_v40 = vrot.slane %v1743_v59, 1  ;;  %v1742_v22 = vsel %vm3145_vm2, %v1597_v25, 0  ;;  %v1800_v48 = vshll.u32 %v1743_v59, 16 }
 0x1af   : > { %v3820_v4 = vsel %vm3145_vm2, 0, %v1607_v30  ;;  %v1973_v62 = vrot.slane %v1742_v22, 1  ;;  %v1788_v51 = vshll.u32 %v1742_v22, 16 }
 0x1b0   : > { %2094 = vrot.lane.b32.xlu1 %v3820_v4, %s3101_s26  ;;  %2188 = vrot.lane.b32.xlu0 %v3820_v4, %s3102_s29  ;;  %v3833_v38 = vsel %vm3145_vm2, 0, %v1600_v32  ;;  %v1975_v5 = vrot.slane %v3820_v4, 1  ;;  %v1795_v23 = vshll.u32 %v3820_v4, 16  ;;  %v1793_v24 = vshrl.u32 %v3820_v4, 16 }
 0x1b1   : > { %v1972_v28 = vrot.slane %v3833_v38, 1  ;;  %v1783_v47 = vshll.u32 %v3833_v38, 16  ;;  %v1802_v53 = vrot.slane %v1800_v48, 1  ;;  %v1781_v1 = vshrl.u32 %v3833_v38, 16 }
 0x1b2   : > { %v1977_v17 = vsel %vm721_vm3, %v1975_v5, %v1976_v40  ;;  %v1797_v42 = vrot.slane %v1795_v23, 1  ;;  %v1790_v14 = vrot.slane %v1788_v51, 1 }
 0x1b3   : > { %v1974_v54 = vsel %vm721_vm3, %v1972_v28, %v1973_v62  ;;  %v1785_v60 = vrot.slane %v1783_v47, 1 }
 0x1b4   : > { %2186 = vrot.lane.b32.xlu1 %v3833_v38, %s3102_s29  ;;  %2092 = vrot.lane.b32.xlu0 %v3833_v38, %s3101_s26  ;;  %v1798_v55 = vor.u32 %v1797_v42, %v1793_v24 }
 0x1b5   : > { %v1786_v13 = vor.u32 %v1785_v60, %v1781_v1 }
 0x1b6   : > { %v1803_v41 = vsel %vm496_vm4, %v1798_v55, %v1802_v53 }
 0x1b7   : > { %v1791_v0 = vsel %vm496_vm4, %v1786_v13, %v1790_v14 }
 0x1b8   : > { %2158 = vrot.lane.b32.xlu1 %v1977_v17, %s3103_s7  ;;  %2248 = vrot.lane.b32.xlu0 %v1977_v17, %s3106_s10 }
 0x1bc   : > { %2062 = vrot.lane.b32.xlu1 %v1974_v54, %s3099_s24  ;;  %2064 = vrot.lane.b32.xlu0 %v1977_v17, %s3099_s24 }
 0x1c0   : > { %2126 = vrot.lane.b32.xlu1 %v1803_v41, %s3104_s8  ;;  %v2972_v19 = vpop.f32.mrb[8].mxu0  ;;  %2246 = vrot.lane.b32.xlu0 %v1974_v54, %s3106_s10 }
 0x1c1   : > { %v1446_v56 = vadd.f32 %v2972_v19, %v3745_v7  ;;  %v1437_v63 = vpop.f32.mrb[9].mxu0 }
 0x1c2   : > { %v1438_v35 = vadd.f32 %v3745_v7, %v1437_v63  ;;  %v2973_v6 = vpop.f32.mrb[10].mxu0 }
 0x1c3   : > { %v1449_v43 = vadd.f32 %v2973_v6, %v3745_v7  ;;  %v1440_v12 = vpop.f32.mrb[11].mxu0  ;;  %v1542_v61 = vmax.f32 %v1446_v56, 0.0 }
 0x1c4   : > { %v1441_v57 = vadd.f32 %v3745_v7, %v1440_v12  ;;  %2034 = vrot.lane.b32.xlu1 %v1803_v41, %s3100_s25  ;;  %2156 = vrot.lane.b32.xlu0 %v1974_v54, %s3103_s7  ;;  %v1540_v52 = vmax.f32 %v1438_v35, 0.0 }
 0x1c5   : > { %v1543_v46 = vmax.f32 %v1449_v43, 0.0 }
 0x1c6   : > { %v1541_v29 = vmax.f32 %v1441_v57, 0.0 }
 0x1c7   : > { %v1569_v8 = vpack.c.bf16 %v1543_v46, %v1542_v61 }
 0x1c8   : > { %v1568_v44 = vpack.c.bf16 %v1541_v29, %v1540_v52  ;;  %2216 = vrot.lane.b32.xlu1 %v1791_v0, %s3105_s9  ;;  %2218 = vrot.lane.b32.xlu0 %v1803_v41, %s3105_s9 }
 0x1c9   : > { %v1616_v11 = vshrl.u32 %v1569_v8, 16  ;;  %v1619_v3 = vshll.u32 %v1569_v8, 16 }
 0x1ca   : > { %v1609_v15 = vshrl.u32 %v1568_v44, 16  ;;  %v1612_v18 = vshll.u32 %v1568_v44, 16 }
 0x1cb   : > { %v1618_v16 = vrot.slane %v1616_v11, 7 }
 0x1cc   : > { %v1611_v49 = vrot.slane %v1609_v15, 7  ;;  %2032 = vrot.lane.b32.xlu1 %v1791_v0, %s3100_s25  ;;  %2124 = vrot.lane.b32.xlu0 %v1791_v0, %s3104_s8 }
 0x1cd   : > { %v1621_v9 = vor.u32 %v1619_v3, %v1618_v16  ;;  %v1745_v26 = vsel %vm3145_vm2, %v1618_v16, 0 }
 0x1ce   : > { %v1614_v20 = vor.u32 %v1612_v18, %v1611_v49  ;;  %v1982_v32 = vrot.slane %v1745_v26, 1  ;;  %v1744_v37 = vsel %vm3145_vm2, %v1611_v49, 0  ;;  %v1824_v22 = vshll.u32 %v1745_v26, 16 }
 0x1cf   : > { %v3877_v21 = vsel %vm3145_vm2, 0, %v1621_v9  ;;  %v1979_v39 = vrot.slane %v1744_v37, 1  ;;  %v1812_v47 = vshll.u32 %v1744_v37, 16 }
 0x1d0   : > { %2098 = vrot.lane.b32.xlu1 %v3877_v21, %s3101_s26  ;;  %2192 = vrot.lane.b32.xlu0 %v3877_v21, %s3102_s29  ;;  %v3887_v25 = vsel %vm3145_vm2, 0, %v1614_v20  ;;  %v1981_v30 = vrot.slane %v3877_v21, 1  ;;  %v1819_v10 = vshll.u32 %v3877_v21, 16  ;;  %v1817_v40 = vshrl.u32 %v3877_v21, 16 }
 0x1d1   : > { %v1978_v5 = vrot.slane %v3887_v25, 1  ;;  %v1807_v42 = vshll.u32 %v3887_v25, 16  ;;  %v1826_v34 = vrot.slane %v1824_v22, 1  ;;  %v1805_v55 = vshrl.u32 %v3887_v25, 16 }
 0x1d2   : > { %v1983_v59 = vsel %vm721_vm3, %v1981_v30, %v1982_v32  ;;  %v1821_v23 = vrot.slane %v1819_v10, 1  ;;  %v1814_v35 = vrot.slane %v1812_v47, 1 }
 0x1d3   : > { %v1980_v17 = vsel %vm721_vm3, %v1978_v5, %v1979_v39  ;;  %v1809_v24 = vrot.slane %v1807_v42, 1 }
 0x1d4   : > { %2190 = vrot.lane.b32.xlu1 %v3887_v25, %s3102_s29  ;;  %2096 = vrot.lane.b32.xlu0 %v3887_v25, %s3101_s26  ;;  %v1822_v28 = vor.u32 %v1821_v23, %v1817_v40 }
 0x1d5   : > { %v1810_v56 = vor.u32 %v1809_v24, %v1805_v55 }
 0x1d6   : > { %v1827_v62 = vsel %vm496_vm4, %v1822_v28, %v1826_v34 }
 0x1d7   : > { %v1815_v13 = vsel %vm496_vm4, %v1810_v56, %v1814_v35 }
 0x1d8   : > { %2162 = vrot.lane.b32.xlu1 %v1983_v59, %s3103_s7  ;;  %2252 = vrot.lane.b32.xlu0 %v1983_v59, %s3106_s10 }
 0x1dc   : > { %2066 = vrot.lane.b32.xlu1 %v1980_v17, %s3099_s24  ;;  %2068 = vrot.lane.b32.xlu0 %v1983_v59, %s3099_s24 }
 0x1e0   : > { %2130 = vrot.lane.b32.xlu1 %v1827_v62, %s3104_s8  ;;  %v2976_v48 = vpop.f32.mrb[12].mxu0  ;;  %2250 = vrot.lane.b32.xlu0 %v1980_v17, %s3106_s10 }
 0x1e1   : > { %v1462_v50 = vadd.f32 %v2976_v48, %v3745_v7  ;;  %v1453_v54 = vpop.f32.mrb[13].mxu0 }
 0x1e2   : > { %v1454_v53 = vadd.f32 %v3745_v7, %v1453_v54  ;;  %v2977_v41 = vpop.f32.mrb[14].mxu0 }
 0x1e3   : > { %v1465_v60 = vadd.f32 %v2977_v41, %v3745_v7  ;;  %v1456_v19 = vpop.f32.mrb[15].mxu0  ;;  %v1546_v1 = vmax.f32 %v1462_v50, 0.0 }
 0x1e4   : > { %v1457_v63 = vadd.f32 %v3745_v7, %v1456_v19  ;;  %2038 = vrot.lane.b32.xlu1 %v1827_v62, %s3100_s25  ;;  %2160 = vrot.lane.b32.xlu0 %v1980_v17, %s3103_s7  ;;  %v1544_v6 = vmax.f32 %v1454_v53, 0.0 }
 0x1e5   : > { %v1547_v51 = vmax.f32 %v1465_v60, 0.0 }
 0x1e6   : > { %v1545_v43 = vmax.f32 %v1457_v63, 0.0 }
 0x1e7   : > { %v1571_v12 = vpack.c.bf16 %v1547_v51, %v1546_v1 }
 0x1e8   : > { %v1570_v57 = vpack.c.bf16 %v1545_v43, %v1544_v6  ;;  %2220 = vrot.lane.b32.xlu1 %v1815_v13, %s3105_s9  ;;  %2222 = vrot.lane.b32.xlu0 %v1827_v62, %s3105_s9 }
 0x1e9   : > { %v1630_v61 = vshrl.u32 %v1571_v12, 16  ;;  %v1633_v52 = vshll.u32 %v1571_v12, 16 }
 0x1ea   : > { %v1623_v46 = vshrl.u32 %v1570_v57, 16  ;;  %v1626_v0 = vshll.u32 %v1570_v57, 16 }
 0x1eb   : > { %v1632_v14 = vrot.slane %v1630_v61, 7 }
 0x1ec   : > { %v1625_v29 = vrot.slane %v1623_v46, 7  ;;  %2036 = vrot.lane.b32.xlu1 %v1815_v13, %s3100_s25  ;;  %2128 = vrot.lane.b32.xlu0 %v1815_v13, %s3104_s8 }
 0x1ed   : > { %v1635_v8 = vor.u32 %v1633_v52, %v1632_v14  ;;  %v1747_v15 = vsel %vm3145_vm2, %v1632_v14, 0 }
 0x1ee   : > { %v1628_v44 = vor.u32 %v1626_v0, %v1625_v29  ;;  %v1988_v9 = vrot.slane %v1747_v15, 1  ;;  %v1746_v18 = vsel %vm3145_vm2, %v1625_v29, 0  ;;  %v1848_v37 = vshll.u32 %v1747_v15, 16 }
 0x1ef   : > { %v3923_v11 = vsel %vm3145_vm2, 0, %v1635_v8  ;;  %v1985_v10 = vrot.slane %v1746_v18, 1  ;;  %v1836_v62 = vshll.u32 %v1746_v18, 16 }
 0x1f0   : > { %2102 = vrot.lane.b32.xlu1 %v3923_v11, %s3101_s26  ;;  %2196 = vrot.lane.b32.xlu0 %v3923_v11, %s3102_s29  ;;  %v3933_v16 = vsel %vm3145_vm2, 0, %v1628_v44  ;;  %v1987_v3 = vrot.slane %v3923_v11, 1  ;;  %v1843_v49 = vshll.u32 %v3923_v11, 16  ;;  %v1841_v32 = vshrl.u32 %v3923_v11, 16 }
 0x1f1   : > { %v1984_v26 = vrot.slane %v3933_v16, 1  ;;  %v1831_v23 = vshll.u32 %v3933_v16, 16  ;;  %v1850_v39 = vrot.slane %v1848_v37, 1  ;;  %v1829_v34 = vshrl.u32 %v3933_v16, 16 }
 0x1f2   : > { %v1989_v20 = vsel %vm721_vm3, %v1987_v3, %v1988_v9  ;;  %v1845_v30 = vrot.slane %v1843_v49, 1  ;;  %v1838_v19 = vrot.slane %v1836_v62, 1 }
 0x1f3   : > { %v1986_v59 = vsel %vm721_vm3, %v1984_v26, %v1985_v10  ;;  %v1833_v22 = vrot.slane %v1831_v23, 1 }
 0x1f4   : > { %2194 = vrot.lane.b32.xlu1 %v3933_v16, %s3102_s29  ;;  %2100 = vrot.lane.b32.xlu0 %v3933_v16, %s3101_s26  ;;  %v1846_v5 = vor.u32 %v1845_v30, %v1841_v32 }
 0x1f5   : > { %v1834_v47 = vor.u32 %v1833_v22, %v1829_v34 }
 0x1f6   : > { %v1851_v40 = vsel %vm496_vm4, %v1846_v5, %v1850_v39 }
 0x1f7   : > { %v1839_v6 = vsel %vm496_vm4, %v1834_v47, %v1838_v19 }
 0x1f8   : > { %2166 = vrot.lane.b32.xlu1 %v1989_v20, %s3103_s7  ;;  %2256 = vrot.lane.b32.xlu0 %v1989_v20, %s3106_s10 }
 0x1fc   : > { %2070 = vrot.lane.b32.xlu1 %v1986_v59, %s3099_s24  ;;  %2072 = vrot.lane.b32.xlu0 %v1989_v20, %s3099_s24 }
 0x200   : > { %2134 = vrot.lane.b32.xlu1 %v1851_v40, %s3104_s8  ;;  %v2980_v17 = vpop.f32.mrb[16].mxu0  ;;  %2254 = vrot.lane.b32.xlu0 %v1986_v59, %s3106_s10 }
 0x201   : > { %v1478_v28 = vadd.f32 %v2980_v17, %v3745_v7  ;;  %v1469_v42 = vpop.f32.mrb[17].mxu0 }
 0x202   : > { %v1470_v24 = vadd.f32 %v3745_v7, %v1469_v42  ;;  %v2981_v48 = vpop.f32.mrb[18].mxu0  ;;  %v3959_v54 = vpop.permute.xlu0 %2184 }
 0x203   : > { %v1481_v50 = vadd.f32 %v2981_v48, %v3745_v7  ;;  %v1472_v55 = vpop.f32.mrb[19].mxu0  ;;  %v1550_v41 = vmax.f32 %v1478_v28, 0.0  ;;  %v3964_v63 = vpop.permute.xlu1 %2090 }
 0x204   : > { %v1473_v53 = vadd.f32 %v3745_v7, %v1472_v55  ;;  %2042 = vrot.lane.b32.xlu1 %v1851_v40, %s3100_s25  ;;  %2164 = vrot.lane.b32.xlu0 %v1986_v59, %s3103_s7  ;;  %v1548_v56 = vmax.f32 %v1470_v24, 0.0 }
 0x205   : > { %v1551_v60 = vmax.f32 %v1481_v50, 0.0 }
 0x206   : > { %v1549_v1 = vmax.f32 %v1473_v53, 0.0  ;;  %v2089_v35 = vpop.permute.xlu0 %2088 }
 0x207   : > { %v1573_v51 = vpack.c.bf16 %v1551_v60, %v1550_v41  ;;  %v3971_v52 = vpop.permute.xlu1 %2154  ;;  %v2335_v48 = vsel %vm1109_vm8, %v3418_v27, %v2089_v35 }
 0x208   : > { %v1572_v43 = vpack.c.bf16 %v1549_v1, %v1548_v56  ;;  %2224 = vrot.lane.b32.xlu1 %v1839_v6, %s3105_s9  ;;  %2226 = vrot.lane.b32.xlu0 %v1851_v40, %s3105_s9 }
 0x209   : > { %v1644_v12 = vshrl.u32 %v1573_v51, 16  ;;  %v1647_v61 = vshll.u32 %v1573_v51, 16 }
 0x20a   : > { %v1637_v13 = vshrl.u32 %v1572_v43, 16  ;;  %v3969_v46 = vpop.permute.xlu0 %2244  ;;  %v1640_v8 = vshll.u32 %v1572_v43, 16 }
 0x20b   : > { %v1646_v57 = vrot.slane %v1644_v12, 7  ;;  %v3987_v49 = vpop.permute.xlu1 %2058 }
 0x20c   : > { %v1639_v14 = vrot.slane %v1637_v13, 7  ;;  %2040 = vrot.lane.b32.xlu1 %v1839_v6, %s3100_s25  ;;  %2132 = vrot.lane.b32.xlu0 %v1839_v6, %s3104_s8 }
 0x20d   : > { %v1649_v29 = vor.u32 %v1647_v61, %v1646_v57  ;;  %v1749_v3 = vsel %vm3145_vm2, %v1646_v57, 0 }
 0x20e   : > { %v1642_v0 = vor.u32 %v1640_v8, %v1639_v14  ;;  %v3975_v44 = vpop.permute.xlu0 %2060  ;;  %v1994_v30 = vrot.slane %v1749_v3, 1  ;;  %v1748_v10 = vsel %vm3145_vm2, %v1639_v14, 0  ;;  %v1872_v22 = vshll.u32 %v1749_v3, 16 }
 0x20f   : > { %v3979_v15 = vsel %vm3145_vm2, 0, %v1649_v29  ;;  %v4003_v23 = vpop.permute.xlu1 %2122  ;;  %v1991_v39 = vrot.slane %v1748_v10, 1  ;;  %v1860_v51 = vshll.u32 %v1748_v10, 16 }
 0x210   : > { %2106 = vrot.lane.b32.xlu1 %v3979_v15, %s3101_s26  ;;  %2200 = vrot.lane.b32.xlu0 %v3979_v15, %s3102_s29  ;;  %v3991_v18 = vsel %vm3145_vm2, 0, %v1642_v0  ;;  %v1993_v20 = vrot.slane %v3979_v15, 1  ;;  %v1867_v26 = vshll.u32 %v3979_v15, 16  ;;  %v1865_v40 = vshrl.u32 %v3979_v15, 16 }
 0x211   : > { %v1990_v59 = vrot.slane %v3991_v18, 1  ;;  %v1855_v34 = vshll.u32 %v3991_v18, 16  ;;  %v1874_v62 = vrot.slane %v1872_v22, 1  ;;  %v1853_v1 = vshrl.u32 %v3991_v18, 16 }
 0x212   : > { %v2153_v9 = vpop.permute.xlu0 %2152  ;;  %v1995_v37 = vsel %vm721_vm3, %v1993_v20, %v1994_v30  ;;  %v1869_v5 = vrot.slane %v1867_v26, 1 }
 0x213   : > { %v1992_v28 = vsel %vm721_vm3, %v1990_v59, %v1991_v39  ;;  %v4012_v24 = vpop.permute.xlu1 %2030  ;;  %v1857_v47 = vrot.slane %v1855_v34, 1 }
 0x214   : > { %2198 = vrot.lane.b32.xlu1 %v3991_v18, %s3102_s29  ;;  %2104 = vrot.lane.b32.xlu0 %v3991_v18, %s3101_s26  ;;  %v1870_v42 = vor.u32 %v1869_v5, %v1865_v40 }
 0x215   : > { %v1858_v14 = vor.u32 %v1857_v47, %v1853_v1 }
 0x216   : > { %v2215_v32 = vpop.permute.xlu0 %2214  ;;  %v1875_v55 = vsel %vm496_vm4, %v1870_v42, %v1874_v62 }
 0x218   : > { %2170 = vrot.lane.b32.xlu1 %v1995_v37, %s3103_s7  ;;  %2260 = vrot.lane.b32.xlu0 %v1995_v37, %s3106_s10 }
 0x21a   : > { %v2029_v17 = vpop.permute.xlu0 %2028 }
 0x21b   : > { %v2275_v42 = vsel %vm1043_vm6, %v3789_v45, %v2029_v17 }
 0x21c   : > { %2074 = vrot.lane.b32.xlu1 %v1992_v28, %s3099_s24  ;;  %2076 = vrot.lane.b32.xlu0 %v1995_v37, %s3099_s24  ;;  %v2305_v47 = vsel %vm1076_vm7, %v2275_v42, %v3987_v49 }
 0x21e   : > { %v2121_v50 = vpop.permute.xlu0 %2120 }
 0x21f   : > { %v2367_v53 = vsel %vm1142_vm9, %v2335_v48, %v2121_v50 }
 0x220   : > { %2138 = vrot.lane.b32.xlu1 %v1875_v55, %s3104_s8  ;;  %v2984_v41 = vpop.f32.mrb[20].mxu0  ;;  %2258 = vrot.lane.b32.xlu0 %v1992_v28, %s3106_s10  ;;  %v2399_v60 = vsel %vm1175_vm10, %v2367_v53, %v2153_v9 }
 0x221   : > { %v1494_v19 = vadd.f32 %v2984_v41, %v3745_v7  ;;  %v1485_v56 = vpop.f32.mrb[21].mxu0  ;;  %v2431_v43 = vsel %vm1208_vm11, %v2399_v60, %v3959_v54  ;;  %v1862_v54 = vrot.slane %v1860_v51, 1 }
 0x222   : > { %v1486_v27 = vadd.f32 %v3745_v7, %v1485_v56  ;;  %v4024_v35 = vpop.permute.xlu1 %2094  ;;  %v2985_v6 = vpop.f32.mrb[22].mxu0  ;;  %v2462_v61 = vsel %vm1241_vm12, %v2431_v43, %v2215_v32  ;;  %v2337_v56 = vsel %vm1109_vm8, %v2305_v47, %v3964_v63 }
 0x223   : > { %v1497_v12 = vadd.f32 %v2985_v6, %v3745_v7  ;;  %v4029_v13 = vpop.permute.xlu0 %2188  ;;  %v1488_v57 = vpop.f32.mrb[23].mxu0  ;;  %v2493_v8 = vsel %vm1274_vm13, %v2462_v61, %v3969_v46  ;;  %v1554_v0 = vmax.f32 %v1494_v19, 0.0  ;;  %v1863_v32 = vsel %vm496_vm4, %v1858_v14, %v1862_v54 }
 0x224   : > { %v1489_v29 = vadd.f32 %v3745_v7, %v1488_v57  ;;  %2046 = vrot.lane.b32.xlu1 %v1875_v55, %s3100_s25  ;;  %2168 = vrot.lane.b32.xlu0 %v1992_v28, %s3103_s7  ;;  %v1552_v9 = vmax.f32 %v1486_v27, 0.0 }
 0x225   : > { %v1555_v3 = vmax.f32 %v1497_v12, 0.0  ;;  %3000 = vmatprep.mubr.msk.bf16.mxu1 %vm1334_vm14, %v2493_v8  ;;  %v2369_v12 = vsel %vm1142_vm9, %v2337_v56, %v4003_v23  ;;  %v2277_v23 = vsel %vm1043_vm6, %v3780_v33, %v4012_v24 }
 0x226   : > { %v1553_v20 = vmax.f32 %v1489_v29, 0.0  ;;  %v2187_v26 = vpop.permute.xlu1 %2186  ;;  %v2401_v29 = vsel %vm1175_vm10, %v2369_v12, %v3971_v52  ;;  %v2307_v33 = vsel %vm1076_vm7, %v2277_v23, %v3975_v44 }
 0x227   : > { %v1575_v30 = vpack.c.bf16 %v1555_v3, %v1554_v0  ;;  %v4038_v10 = vpop.permute.xlu0 %2092  ;;  %v2433_v0 = vsel %vm1208_vm11, %v2401_v29, %v2187_v26 }
 0x228   : > { %v1574_v37 = vpack.c.bf16 %v1553_v20, %v1552_v9  ;;  %2228 = vrot.lane.b32.xlu1 %v1863_v32, %s3105_s9  ;;  %2230 = vrot.lane.b32.xlu0 %v1875_v55, %s3105_s9 }
 0x229   : > { %v1658_v59 = vshrl.u32 %v1575_v30, 16  ;;  %v1661_v34 = vshll.u32 %v1575_v30, 16 }
 0x22a   : > { %v1651_v46 = vshrl.u32 %v1574_v37, 16  ;;  %v4043_v5 = vpop.permute.xlu1 %2158  ;;  %v1654_v28 = vshll.u32 %v1574_v37, 16 }
 0x22b   : > { %v4045_v39 = vpop.permute.xlu0 %2248  ;;  %v1660_v40 = vrot.slane %v1658_v59, 7  ;;  %v2339_v59 = vsel %vm1109_vm8, %v2307_v33, %v4038_v10 }
 0x22c   : > { %v1653_v22 = vrot.slane %v1651_v46, 7  ;;  %2044 = vrot.lane.b32.xlu1 %v1863_v32, %s3100_s25  ;;  %2136 = vrot.lane.b32.xlu0 %v1863_v32, %s3104_s8 }
 0x22d   : > { %v1663_v53 = vor.u32 %v1661_v34, %v1660_v40  ;;  %v1751_v54 = vsel %vm3145_vm2, %v1660_v40, 0 }
 0x22e   : > { %v1656_v62 = vor.u32 %v1654_v28, %v1653_v22  ;;  %v1750_v48 = vsel %vm3145_vm2, %v1653_v22, 0  ;;  %v4053_v50 = vpop.permute.xlu1 %2062  ;;  %v1896_v37 = vshll.u32 %v1751_v54, 16 }
 0x22f   : > { %v4055_v55 = vpop.permute.xlu0 %2064  ;;  %v1997_v17 = vrot.slane %v1750_v48, 1  ;;  %v4075_v27 = vsel %vm3145_vm2, 0, %v1663_v53  ;;  %v1884_v43 = vshll.u32 %v1750_v48, 16 }
 0x230   : > { %v4061_v41 = vsel %vm3145_vm2, 0, %v1656_v62  ;;  %v1891_v14 = vshll.u32 %v4075_v27, 16  ;;  %v1889_v26 = vshrl.u32 %v4075_v27, 16  ;;  %v1898_v53 = vrot.slane %v1896_v37, 1 }
 0x231   : > { %2202 = vrot.lane.b32.xlu1 %v4061_v41, %s3102_s29  ;;  %v1996_v45 = vrot.slane %v4061_v41, 1  ;;  %v1879_v60 = vshll.u32 %v4061_v41, 16  ;;  %v1877_v6 = vshrl.u32 %v4061_v41, 16  ;;  %v1886_v8 = vrot.slane %v1884_v43, 1 }
 0x232   : > { %v4067_v19 = vpop.permute.xlu1 %2126  ;;  %v1893_v32 = vrot.slane %v1891_v14, 1 }
 0x233   : > { %v2247_v1 = vpop.permute.xlu0 %2246  ;;  %v1998_v49 = vsel %vm721_vm3, %v1996_v45, %v1997_v17  ;;  %v1881_v51 = vrot.slane %v1879_v60, 1 }
 0x234   : > { %2262 = vrot.lane.b32.xlu0 %v1998_v49, %s3106_s10  ;;  %v1894_v28 = vor.u32 %v1893_v32, %v1889_v26 }
 0x235   : > { %2110 = vrot.lane.b32.xlu1 %v4075_v27, %s3101_s26  ;;  %v1882_v61 = vor.u32 %v1881_v51, %v1877_v6  ;;  %v1999_v51 = vrot.slane %v4075_v27, 1 }
 0x236   : > { %v4082_v63 = vpop.permute.xlu1 %2034 }
 0x237   : > { %v2157_v57 = vpop.permute.xlu0 %2156  ;;  %v1887_v30 = vsel %vm496_vm4, %v1882_v61, %v1886_v8 }
 0x238   : > { %2108 = vrot.lane.b32.xlu0 %v4061_v41, %s3101_s26 }
 0x239   : > { %2078 = vrot.lane.b32.xlu1 %v1998_v49, %s3099_s24 }
 0x23a   : > { %v2217_v3 = vpop.permute.xlu1 %2216 }
 0x23b   : > { %v2464_v9 = vsel %vm1241_vm12, %v2433_v0, %v2217_v3  ;;  %v2219_v20 = vpop.permute.xlu0 %2218 }
 0x23c   : > { %2140 = vrot.lane.b32.xlu0 %v1887_v30, %s3104_s8  ;;  %v2495_v52 = vsel %vm1274_vm13, %v2464_v9, %v2247_v1 }
 0x23d   : > { %2232 = vrot.lane.b32.xlu1 %v1887_v30, %s3105_s9  ;;  %3001 = vmatmul.mubr.msk.bf16.vlgmr.msra.gmra.mrb[0].mxu1 %vm1334_vm14, %v2495_v52 }
 0x23e   : > { %v2033_v24 = vpop.permute.xlu1 %2032 }
 0x23f   : > { %v2125_v46 = vpop.permute.xlu0 %2124 }
 0x240   : > { %v2371_v40 = vsel %vm1142_vm9, %v2339_v59, %v2125_v46  ;;  %v2988_v22 = vpop.f32.mrb[24].mxu0  ;;  %2172 = vrot.lane.b32.xlu0 %v1998_v49, %s3103_s7  ;;  %v1899_v49 = vsel %vm496_vm4, %v1894_v28, %v1898_v53 }
 0x241   : > { %v2403_v42 = vsel %vm1175_vm10, %v2371_v40, %v2157_v57  ;;  %v1510_v34 = vadd.f32 %v2988_v22, %v3745_v7  ;;  %2048 = vrot.lane.b32.xlu1 %v1887_v30, %s3100_s25  ;;  %v1501_v44 = vpop.f32.mrb[25].mxu0 }
 0x242   : > { %v2435_v62 = vsel %vm1208_vm11, %v2403_v42, %v4029_v13  ;;  %v1502_v48 = vadd.f32 %v3745_v7, %v1501_v44  ;;  %v4115_v10 = vpop.permute.xlu1 %2098  ;;  %v2989_v47 = vpop.f32.mrb[26].mxu0 }
 0x243   : > { %v1513_v45 = vadd.f32 %v2989_v47, %v3745_v7  ;;  %v4118_v17 = vpop.permute.xlu0 %2192  ;;  %v1504_v60 = vpop.f32.mrb[27].mxu0  ;;  %v2466_v56 = vsel %vm1241_vm12, %v2435_v62, %v2219_v20  ;;  %v1558_v6 = vmax.f32 %v1510_v34, 0.0 }
 0x244   : > { %v1505_v1 = vadd.f32 %v3745_v7, %v1504_v60  ;;  %2204 = vrot.lane.b32.xlu0 %v4075_v27, %s3102_s29  ;;  %v2497_v13 = vsel %vm1274_vm13, %v2466_v56, %v4045_v39  ;;  %v1556_v12 = vmax.f32 %v1502_v48, 0.0  ;;  %v2000_v7 = vrot.slane %v1751_v54, 1 }
 0x245   : > { %v1559_v43 = vmax.f32 %v1513_v45, 0.0  ;;  %3004 = vmatprep.mubr.msk.bf16.mxu1 %vm1334_vm14, %v2497_v13  ;;  %2142 = vrot.lane.b32.xlu1 %v1899_v49, %s3104_s8  ;;  %v2279_v54 = vsel %vm1043_vm6, %v3833_v38, %v2033_v24 }
 0x246   : > { %v1557_v57 = vmax.f32 %v1505_v1, 0.0  ;;  %v2191_v61 = vpop.permute.xlu1 %2190  ;;  %v2001_v39 = vsel %vm721_vm3, %v1999_v51, %v2000_v7  ;;  %v2309_v26 = vsel %vm1076_vm7, %v2279_v54, %v4053_v50 }
 0x247   : > { %v1577_v14 = vpack.c.bf16 %v1559_v43, %v1558_v6  ;;  %v2097_v29 = vpop.permute.xlu0 %2096  ;;  %v2341_v28 = vsel %vm1109_vm8, %v2309_v26, %v4024_v35 }
 0x248   : > { %v1576_v8 = vpack.c.bf16 %v1557_v57, %v1556_v12  ;;  %2234 = vrot.lane.b32.xlu0 %v1899_v49, %s3105_s9  ;;  %v2373_v45 = vsel %vm1142_vm9, %v2341_v28, %v4067_v19  ;;  %v2281_v19 = vsel %vm1043_vm6, %v3820_v4, %v4082_v63  ;;  %v3057_v63 = vld [vmem:[%s4542_s2] ss:$0 sm:$0xff] }
 0x249   : > { %2174 = vrot.lane.b32.xlu1 %v2001_v39, %s3103_s7  ;;  %v1672_v37 = vshrl.u32 %v1577_v14, 16  ;;  %v1675_v53 = vshll.u32 %v1577_v14, 16  ;;  %v2405_v13 = vsel %vm1175_vm10, %v2373_v45, %v4043_v5  ;;  %v2311_v4 = vsel %vm1076_vm7, %v2281_v19, %v4055_v55 }
 0x24a   : > { %v1665_v0 = vshrl.u32 %v1576_v8, 16  ;;  %v4133_v3 = vpop.permute.xlu1 %2162  ;;  %v1668_v20 = vshll.u32 %v1576_v8, 16  ;;  %v2437_v51 = vsel %vm1208_vm11, %v2405_v13, %v2191_v61  ;;  %v2343_v8 = vsel %vm1109_vm8, %v2311_v4, %v2097_v29 }
 0x24b   : > { %v4135_v23 = vpop.permute.xlu0 %2252  ;;  %v1674_v62 = vrot.slane %v1672_v37, 7 }
 0x24c   : > { %v1667_v9 = vrot.slane %v1665_v0, 7  ;;  %2264 = vrot.lane.b32.xlu0 %v2001_v39, %s3106_s10 }
 0x24d   : > { %v1677_v1 = vor.u32 %v1675_v53, %v1674_v62  ;;  %v1753_v37 = vsel %vm3145_vm2, %v1674_v62, 0 }
 0x24e   : > { %v1670_v30 = vor.u32 %v1668_v20, %v1667_v9  ;;  %v1752_v52 = vsel %vm3145_vm2, %v1667_v9, 0  ;;  %v4142_v32 = vpop.permute.xlu1 %2066  ;;  %v1920_v53 = vshll.u32 %v1753_v37, 16 }
 0x24f   : > { %v4144_v33 = vpop.permute.xlu0 %2068  ;;  %v2003_v24 = vrot.slane %v1752_v52, 1  ;;  %v1908_v40 = vshll.u32 %v1752_v52, 16  ;;  %v4183_v5 = vsel %vm3145_vm2, 0, %v1677_v1 }
 0x250   : > { %v4150_v59 = vsel %vm3145_vm2, 0, %v1670_v30  ;;  %v1915_v20 = vshll.u32 %v4183_v5, 16 }
 0x251   : > { %2206 = vrot.lane.b32.xlu1 %v4150_v59, %s3102_s29  ;;  %v2002_v38 = vrot.slane %v4150_v59, 1  ;;  %v1903_v46 = vshll.u32 %v4150_v59, 16  ;;  %v1901_v34 = vshrl.u32 %v4150_v59, 16  ;;  %v1910_v47 = vrot.slane %v1908_v40, 1 }
 0x252   : > { %v4156_v22 = vpop.permute.xlu1 %2130 }
 0x253   : > { %v2251_v50 = vpop.permute.xlu0 %2250  ;;  %v2004_v42 = vsel %vm721_vm3, %v2002_v38, %v2003_v24  ;;  %v1905_v44 = vrot.slane %v1903_v46, 1 }
 0x254   : > { %2266 = vrot.lane.b32.xlu0 %v2004_v42, %s3106_s10 }
 0x255   : > { %v1906_v48 = vor.u32 %v1905_v44, %v1901_v34  ;;  %v1917_v44 = vrot.slane %v1915_v20, 1 }
 0x256   : > { %v4165_v60 = vpop.permute.xlu1 %2038 }
 0x257   : > { %v2161_v56 = vpop.permute.xlu0 %2160  ;;  %v1911_v35 = vsel %vm496_vm4, %v1906_v48, %v1910_v47 }
 0x258   : > { %2236 = vrot.lane.b32.xlu1 %v1911_v35, %s3105_s9  ;;  %2080 = vrot.lane.b32.xlu0 %v2001_v39, %s3099_s24 }
 0x25a   : > { %v2221_v6 = vpop.permute.xlu1 %2220 }
 0x25b   : > { %v2468_v43 = vsel %vm1241_vm12, %v2437_v51, %v2221_v6  ;;  %v2223_v12 = vpop.permute.xlu0 %2222  ;;  %v1922_v51 = vrot.slane %v1920_v53, 1 }
 0x25c   : > { %2050 = vrot.lane.b32.xlu1 %v1899_v49, %s3100_s25  ;;  %2112 = vrot.lane.b32.xlu0 %v4150_v59, %s3101_s26  ;;  %v2499_v57 = vsel %vm1274_vm13, %v2468_v43, %v2251_v50 }
 0x25d   : > { %v2992_v61 = vpop.f32.mrb[28].mxu0  ;;  %3005 = vmatmul.mubr.msk.bf16.gmra.mrb[4].mxu1 %vm1334_vm14, %v2499_v57 }
 0x25e   : > { %v1526_v49 = vadd.f32 %v3057_v63, %v2992_v61  ;;  %v2037_v7 = vpop.permute.xlu1 %2036  ;;  %v1517_v14 = vpop.f32.mrb[29].mxu0  ;;  %v2006_v61 = vrot.slane %v1753_v37, 1 }
 0x25f   : > { %v1518_v39 = vadd.f32 %v3057_v63, %v1517_v14  ;;  %v2129_v0 = vpop.permute.xlu0 %2128  ;;  %v2993_v9 = vpop.f32.mrb[30].mxu0  ;;  %v2283_v57 = vsel %vm1043_vm6, %v3887_v25, %v2037_v7 }
 0x260   : > { %v2375_v54 = vsel %vm1142_vm9, %v2343_v8, %v2129_v0  ;;  %v1529_v30 = vadd.f32 %v3057_v63, %v2993_v9  ;;  %2052 = vrot.lane.b32.xlu1 %v1911_v35, %s3100_s25  ;;  %v1520_v55 = vpop.f32.mrb[31].mxu0  ;;  %2144 = vrot.lane.b32.xlu0 %v1911_v35, %s3104_s8  ;;  %v1562_v29 = vmax.f32 %v1526_v49, 0.0  ;;  %v2313_v25 = vsel %vm1076_vm7, %v2283_v57, %v4142_v32 }
 0x261   : > { %v2407_v52 = vsel %vm1175_vm10, %v2375_v54, %v2161_v56  ;;  %v1521_v26 = vadd.f32 %v3057_v63, %v1520_v55  ;;  %v1560_v40 = vmax.f32 %v1518_v39, 0.0 }
 0x262   : > { %v2439_v38 = vsel %vm1208_vm11, %v2407_v52, %v4118_v17  ;;  %v1563_v24 = vmax.f32 %v1529_v30, 0.0  ;;  %v4201_v46 = vpop.permute.xlu1 %2102  ;;  %v1913_v17 = vshrl.u32 %v4183_v5, 16  ;;  %v2345_v52 = vsel %vm1109_vm8, %v2313_v25, %v4115_v10 }
 0x263   : > { %v1561_v28 = vmax.f32 %v1521_v26, 0.0  ;;  %v4203_v50 = vpop.permute.xlu0 %2196  ;;  %v2470_v34 = vsel %vm1241_vm12, %v2439_v38, %v2223_v12  ;;  %v2005_v12 = vrot.slane %v4183_v5, 1 }
 0x264   : > { %v1579_v48 = vpack.c.bf16 %v1563_v24, %v1562_v29  ;;  %2082 = vrot.lane.b32.xlu1 %v2004_v42, %s3099_s24  ;;  %2176 = vrot.lane.b32.xlu0 %v2004_v42, %s3103_s7  ;;  %v2501_v62 = vsel %vm1274_vm13, %v2470_v34, %v4135_v23  ;;  %v1918_v1 = vor.u32 %v1917_v44, %v1913_v17 }
 0x265   : > { %v1578_v47 = vpack.c.bf16 %v1561_v28, %v1560_v40  ;;  %3008 = vmatprep.mubr.msk.bf16.mxu1 %vm1334_vm14, %v2501_v62  ;;  %v2007_v39 = vsel %vm721_vm3, %v2005_v12, %v2006_v61  ;;  %v2377_v40 = vsel %vm1142_vm9, %v2345_v52, %v4156_v22  ;;  %v2285_v22 = vsel %vm1043_vm6, %v3877_v21, %v4165_v60 }
 0x266   : > { %v2195_v45 = vpop.permute.xlu1 %2194  ;;  %v1923_v43 = vsel %vm496_vm4, %v1918_v1, %v1922_v51  ;;  %v1686_v7 = vshrl.u32 %v1579_v48, 16  ;;  %v1689_v24 = vshll.u32 %v1579_v48, 16  ;;  %v2409_v62 = vsel %vm1175_vm10, %v2377_v40, %v4133_v3 }
 0x267   : > { %v1679_v56 = vshrl.u32 %v1578_v47, 16  ;;  %v2101_v35 = vpop.permute.xlu0 %2100  ;;  %v1682_v13 = vshll.u32 %v1578_v47, 16  ;;  %v2441_v47 = vsel %vm1208_vm11, %v2409_v62, %v2195_v45  ;;  %v2315_v45 = vsel %vm1076_vm7, %v2285_v22, %v4144_v33 }
 0x268   : > { %2114 = vrot.lane.b32.xlu1 %v4183_v5, %s3101_s26  ;;  %2208 = vrot.lane.b32.xlu0 %v4183_v5, %s3102_s29  ;;  %v1688_v32 = vrot.slane %v1686_v7, 7  ;;  %v2347_v21 = vsel %vm1109_vm8, %v2315_v45, %v2101_v35 }
 0x269   : > { %v1681_v42 = vrot.slane %v1679_v56, 7 }
 0x26a   : > { %v4216_v23 = vpop.permute.xlu1 %2166  ;;  %v1691_v44 = vor.u32 %v1689_v24, %v1688_v32 }
 0x26b   : > { %v1684_v6 = vor.u32 %v1682_v13, %v1681_v42  ;;  %v4218_v19 = vpop.permute.xlu0 %2256  ;;  %v1754_v63 = vsel %vm3145_vm2, %v1681_v42, 0 }
 0x26c   : > { %2146 = vrot.lane.b32.xlu1 %v1923_v43, %s3104_s8  ;;  %2238 = vrot.lane.b32.xlu0 %v1923_v43, %s3105_s9  ;;  %v2009_v20 = vrot.slane %v1754_v63, 1  ;;  %v1932_v30 = vshll.u32 %v1754_v63, 16  ;;  %v1739_v3 = vsel %vm3145_vm2, 0, %v1691_v44 }
 0x26d   : > { %v4228_v4 = vsel %vm3145_vm2, 0, %v1684_v6  ;;  %v2014_v42 = vshll.u32 %v1739_v3, 16  ;;  %v1755_v6 = vsel %vm3145_vm2, %v1688_v32, 0  ;;  %v2012_v63 = vshrl.u32 %v1739_v3, 16 }
 0x26e   : > { %v4232_v49 = vpop.permute.xlu1 %2070  ;;  %v1927_v14 = vshll.u32 %v4228_v4, 16  ;;  %v2008_v0 = vrot.slane %v4228_v4, 1  ;;  %v1925_v54 = vshrl.u32 %v4228_v4, 16  ;;  %v1934_v38 = vrot.slane %v1932_v30, 1 }
 0x26f   : > { %v4235_v8 = vpop.permute.xlu0 %2072  ;;  %v2016_v57 = vrot.slane %v2014_v42, 1  ;;  %v2019_v2 = vshll.u32 %v1755_v6, 16  ;;  %v2026_v7 = vrot.slane %v1755_v6, 1 }
 0x270   : > { %2178 = vrot.lane.b32.xlu1 %v2007_v39, %s3103_s7  ;;  %2268 = vrot.lane.b32.xlu0 %v2007_v39, %s3106_s10  ;;  %v1929_v9 = vrot.slane %v1927_v14, 1  ;;  %v2010_v37 = vsel %vm721_vm3, %v2008_v0, %v2009_v20 }
 0x271   : > { %v2017_v0 = vor.u32 %v2016_v57, %v2012_v63  ;;  %v2021_v25 = vrot.slane %v2019_v2, 1 }
 0x272   : > { %v4244_v55 = vpop.permute.xlu1 %2134  ;;  %v1930_v29 = vor.u32 %v1929_v9, %v1925_v54 }
 0x273   : > { %v2255_v26 = vpop.permute.xlu0 %2254  ;;  %v2022_v54 = vsel %vm496_vm4, %v2017_v0, %v2021_v25 }
 0x274   : > { %2210 = vrot.lane.b32.xlu1 %v4228_v4, %s3102_s29  ;;  %2270 = vrot.lane.b32.xlu0 %v2010_v37, %s3106_s10  ;;  %v1935_v10 = vsel %vm496_vm4, %v1930_v29, %v1934_v38 }
 0x276   : > { %v4254_v28 = vpop.permute.xlu1 %2042 }
 0x277   : > { %v2165_v34 = vpop.permute.xlu0 %2164  ;;  %v2289_v44 = vsel %vm1043_vm6, %v3923_v11, %v4254_v28 }
 0x278   : > { %2240 = vrot.lane.b32.xlu1 %v1935_v10, %s3105_s9  ;;  %2084 = vrot.lane.b32.xlu0 %v2007_v39, %s3099_s24 }
 0x27a   : > { %v2225_v17 = vpop.permute.xlu1 %2224 }
 0x27b   : > { %v2472_v48 = vsel %vm1241_vm12, %v2441_v47, %v2225_v17  ;;  %v2227_v53 = vpop.permute.xlu0 %2226 }
 0x27c   : > { %2054 = vrot.lane.b32.xlu1 %v1923_v43, %s3100_s25  ;;  %2116 = vrot.lane.b32.xlu0 %v4228_v4, %s3101_s26  ;;  %v2503_v56 = vsel %vm1274_vm13, %v2472_v48, %v2255_v26 }
 0x27d   : > { %3009 = vmatmul.mubr.msk.bf16.gmra.mrb[8].mxu1 %vm1334_vm14, %v2503_v56 }
 0x27e   : > { %v2041_v1 = vpop.permute.xlu1 %2040 }
 0x27f   : > { %v2133_v60 = vpop.permute.xlu0 %2132  ;;  %v2287_v30 = vsel %vm1043_vm6, %v3933_v16, %v2041_v1 }
 0x280   : > { %v2379_v13 = vsel %vm1142_vm9, %v2347_v21, %v2133_v60  ;;  %2056 = vrot.lane.b32.xlu1 %v1935_v10, %s3100_s25  ;;  %2148 = vrot.lane.b32.xlu0 %v1935_v10, %s3104_s8 }
 0x281   : > { %v2411_v51 = vsel %vm1175_vm10, %v2379_v13, %v2165_v34 }
 0x282   : > { %v2443_v43 = vsel %vm1208_vm11, %v2411_v51, %v4203_v50  ;;  %v2107_v33 = vpop.permute.xlu1 %2106  ;;  %v2025_v50 = vrot.slane %v1739_v3, 1 }
 0x283   : > { %v2201_v12 = vpop.permute.xlu0 %2200  ;;  %v2474_v35 = vsel %vm1241_vm12, %v2443_v43, %v2227_v53 }
 0x284   : > { %2086 = vrot.lane.b32.xlu1 %v2010_v37, %s3099_s24  ;;  %2180 = vrot.lane.b32.xlu0 %v2010_v37, %s3103_s7  ;;  %v2505_v61 = vsel %vm1274_vm13, %v2474_v35, %v4218_v19  ;;  %v2027_v19 = vsel %vm721_vm3, %v2025_v50, %v2026_v7  ;;  %v2317_v37 = vsel %vm1076_vm7, %v2287_v30, %v4232_v49 }
 0x285   : > { %3012 = vmatprep.mubr.msk.bf16.mxu1 %vm1334_vm14, %v2505_v61  ;;  %v2349_v32 = vsel %vm1109_vm8, %v2317_v37, %v4201_v46 }
 0x286   : > { %v2199_v14 = vpop.permute.xlu1 %2198  ;;  %v2381_v24 = vsel %vm1142_vm9, %v2349_v32, %v4244_v55  ;;  %v2319_v55 = vsel %vm1076_vm7, %v2289_v44, %v4235_v8 }
 0x287   : > { %v2105_v39 = vpop.permute.xlu0 %2104  ;;  %v2413_v16 = vsel %vm1175_vm10, %v2381_v24, %v4216_v23 }
 0x288   : > { %2118 = vrot.lane.b32.xlu1 %v1739_v3, %s3101_s26  ;;  %2212 = vrot.lane.b32.xlu0 %v1739_v3, %s3102_s29  ;;  %v2445_v10 = vsel %vm1208_vm11, %v2413_v16, %v2199_v14  ;;  %v2351_v23 = vsel %vm1109_vm8, %v2319_v55, %v2105_v39 }
 0x28a   : > { %v2171_v9 = vpop.permute.xlu1 %2170 }
 0x28b   : > { %v2261_v20 = vpop.permute.xlu0 %2260 }
 0x28c   : > { %2150 = vrot.lane.b32.xlu1 %v2022_v54, %s3104_s8  ;;  %2272 = vrot.lane.b32.xlu0 %v2027_v19, %s3106_s10 }
 0x28e   : > { %v2075_v52 = vpop.permute.xlu1 %2074 }
 0x28f   : > { %v2077_v26 = vpop.permute.xlu0 %2076 }
 0x290   : > { %2182 = vrot.lane.b32.xlu1 %v2027_v19, %s3103_s7 }
 0x292   : > { %v2139_v29 = vpop.permute.xlu1 %2138 }
 0x293   : > { %v2259_v38 = vpop.permute.xlu0 %2258 }
 0x294   : > { %2242 = vrot.lane.b32.xlu1 %v2022_v54, %s3105_s9 }
 0x296   : > { %v2047_v40 = vpop.permute.xlu1 %2046 }
 0x297   : > { %v2169_v34 = vpop.permute.xlu0 %2168 }
 0x29a   : > { %v2229_v49 = vpop.permute.xlu1 %2228 }
 0x29b   : > { %v2476_v46 = vsel %vm1241_vm12, %v2445_v10, %v2229_v49  ;;  %v2231_v62 = vpop.permute.xlu0 %2230 }
 0x29c   : > { %v2507_v47 = vsel %vm1274_vm13, %v2476_v46, %v2259_v38 }
 0x29d   : > { %3013 = vmatmul.mubr.msk.bf16.gmra.mrb[12].mxu1 %vm1334_vm14, %v2507_v47 }
 0x29e   : > { %v2045_v17 = vpop.permute.xlu1 %2044 }
 0x29f   : > { %v2137_v22 = vpop.permute.xlu0 %2136  ;;  %v2291_v48 = vsel %vm1043_vm6, %v3991_v18, %v2045_v17 }
 0x2a0   : > { %v2383_v53 = vsel %vm1142_vm9, %v2351_v23, %v2137_v22  ;;  %v2321_v56 = vsel %vm1076_vm7, %v2291_v48, %v2075_v52 }
 0x2a1   : > { %v2415_v11 = vsel %vm1175_vm10, %v2383_v53, %v2169_v34  ;;  %v2353_v1 = vsel %vm1109_vm8, %v2321_v56, %v2107_v33  ;;  %v2293_v33 = vsel %vm1043_vm6, %v3979_v15, %v2047_v40 }
 0x2a2   : > { %v2447_v28 = vsel %vm1208_vm11, %v2415_v11, %v2201_v12  ;;  %v2385_v18 = vsel %vm1142_vm9, %v2353_v1, %v2139_v29  ;;  %v2323_v14 = vsel %vm1076_vm7, %v2293_v33, %v2077_v26 }
 0x2a3   : > { %v2203_v3 = vpop.permute.xlu1 %2202  ;;  %v2478_v45 = vsel %vm1241_vm12, %v2447_v28, %v2231_v62  ;;  %v2417_v51 = vsel %vm1175_vm10, %v2385_v18, %v2171_v9 }
 0x2a4   : > { %v2509_v8 = vsel %vm1274_vm13, %v2478_v45, %v2261_v20  ;;  %v2449_v43 = vsel %vm1208_vm11, %v2417_v51, %v2203_v3 }
 0x2a5   : > { %3016 = vmatprep.mubr.msk.bf16.mxu1 %vm1334_vm14, %v2509_v8 }
 0x2a6   : > { %v2263_v21 = vpop.permute.xlu0 %2262 }
 0x2a7   : > { %v2111_v60 = vpop.permute.xlu1 %2110 }
 0x2aa   : > { %v2109_v42 = vpop.permute.xlu0 %2108 }
 0x2ab   : > { %v2079_v13 = vpop.permute.xlu1 %2078  ;;  %v2355_v39 = vsel %vm1109_vm8, %v2323_v14, %v2109_v42 }
 0x2ae   : > { %v2141_v6 = vpop.permute.xlu0 %2140 }
 0x2af   : > { %v2233_v12 = vpop.permute.xlu1 %2232  ;;  %v2387_v50 = vsel %vm1142_vm9, %v2355_v39, %v2141_v6 }
 0x2b0   : > { %v2480_v35 = vsel %vm1241_vm12, %v2449_v43, %v2233_v12 }
 0x2b1   : > { %v2511_v57 = vsel %vm1274_vm13, %v2480_v35, %v2263_v21 }
 0x2b2   : > { %3017 = vmatmul.mubr.msk.bf16.gmra.mrb[16].mxu1 %vm1334_vm14, %v2511_v57  ;;  %v2173_v61 = vpop.permute.xlu0 %2172 }
 0x2b3   : > { %v2049_v63 = vpop.permute.xlu1 %2048  ;;  %v2419_v25 = vsel %vm1175_vm10, %v2387_v50, %v2173_v61 }
 0x2b4   : > { %v2295_v15 = vsel %vm1043_vm6, %v4061_v41, %v2049_v63 }
 0x2b5   : > { %v2325_v30 = vsel %vm1076_vm7, %v2295_v15, %v2079_v13 }
 0x2b6   : > { %v2205_v2 = vpop.permute.xlu0 %2204  ;;  %v2357_v26 = vsel %vm1109_vm8, %v2325_v30, %v2111_v60 }
 0x2b7   : > { %v2143_v7 = vpop.permute.xlu1 %2142  ;;  %v2451_v9 = vsel %vm1208_vm11, %v2419_v25, %v2205_v2 }
 0x2b8   : > { %v2389_v32 = vsel %vm1142_vm9, %v2357_v26, %v2143_v7 }
 0x2ba   : > { %v2235_v0 = vpop.permute.xlu0 %2234 }
 0x2bb   : > { %v2482_v20 = vsel %vm1241_vm12, %v2451_v9, %v2235_v0  ;;  %v2175_v52 = vpop.permute.xlu1 %2174 }
 0x2bc   : > { %v2421_v38 = vsel %vm1175_vm10, %v2389_v32, %v2175_v52 }
 0x2be   : > { %v2265_v54 = vpop.permute.xlu0 %2264 }
 0x2bf   : > { %v2513_v19 = vsel %vm1274_vm13, %v2482_v20, %v2265_v54 }
 0x2c0   : > { %3020 = vmatprep.mubr.msk.bf16.mxu1 %vm1334_vm14, %v2513_v19 }
 0x2c3   : > { %v2207_v37 = vpop.permute.xlu1 %2206 }
 0x2c4   : > { %v2453_v24 = vsel %vm1208_vm11, %v2421_v38, %v2207_v37 }
 0x2c6   : > { %v2267_v29 = vpop.permute.xlu0 %2266 }
 0x2ca   : > { %v2237_v40 = vpop.permute.xlu1 %2236  ;;  %v2081_v34 = vpop.permute.xlu0 %2080 }
 0x2cb   : > { %v2484_v41 = vsel %vm1241_vm12, %v2453_v24, %v2237_v40 }
 0x2cc   : > { %v2515_v16 = vsel %vm1274_vm13, %v2484_v41, %v2267_v29  ;;  %v4400_v41 = vld [vmem:[%s4544_s4] ss:$0 sm:$0xff] }
 0x2cd   : > { %3021 = vmatmul.mubr.msk.bf16.gmra.mrb[20].mxu1 %vm1334_vm14, %v2515_v16 }
 0x2ce   : > { %v2051_v10 = vpop.permute.xlu1 %2050  ;;  %v2113_v49 = vpop.permute.xlu0 %2112 }
 0x2cf   : > { %v2297_v62 = vsel %vm1043_vm6, %v4075_v27, %v2051_v10 }
 0x2d0   : > { %v2327_v17 = vsel %vm1076_vm7, %v2297_v62, %v2081_v34 }
 0x2d1   : > { %v2359_v48 = vsel %vm1109_vm8, %v2327_v17, %v2113_v49 }
 0x2d2   : > { %v2053_v44 = vpop.permute.xlu1 %2052  ;;  %v2145_v46 = vpop.permute.xlu0 %2144 }
 0x2d3   : > { %v2391_v28 = vsel %vm1142_vm9, %v2359_v48, %v2145_v46  ;;  %v2299_v21 = vsel %vm1043_vm6, %v4150_v59, %v2053_v44  ;;  %v3058_v44 = vld [vmem:[%s3169_s23 + $0x10] sm:$0xff] }
 0x2d6   : > { %v2083_v47 = vpop.permute.xlu1 %2082  ;;  %v2177_v55 = vpop.permute.xlu0 %2176 }
 0x2d7   : > { %v2423_v56 = vsel %vm1175_vm10, %v2391_v28, %v2177_v55  ;;  %v2329_v60 = vsel %vm1076_vm7, %v2299_v21, %v2083_v47  ;;  %v3059_v55 = vld [vmem:[%s3169_s23] sm:$0xff] }
 0x2da   : > { %v2115_v23 = vpop.permute.xlu1 %2114  ;;  %v2209_v22 = vpop.permute.xlu0 %2208 }
 0x2db   : > { %v2455_v3 = vsel %vm1208_vm11, %v2423_v56, %v2209_v22  ;;  %v2361_v13 = vsel %vm1109_vm8, %v2329_v60, %v2115_v23  ;;  %v3060_v22 = vld [vmem:[%s3169_s23 + $0x18] sm:$0xff] }
 0x2de   : > { %v2147_v53 = vpop.permute.xlu1 %2146  ;;  %v2239_v11 = vpop.permute.xlu0 %2238 }
 0x2df   : > { %v2486_v45 = vsel %vm1241_vm12, %v2455_v3, %v2239_v11  ;;  %v2393_v51 = vsel %vm1142_vm9, %v2361_v13, %v2147_v53  ;;  %v3061_v53 = vld [vmem:[%s3169_s23 + $0x8] sm:$0xff] }
 0x2e2   : > { %v2179_v8 = vpop.permute.xlu1 %2178  ;;  %v2269_v27 = vpop.permute.xlu0 %2268 }
 0x2e3   : > { %v2517_v1 = vsel %vm1274_vm13, %v2486_v45, %v2269_v27  ;;  %v2425_v6 = vsel %vm1175_vm10, %v2393_v51, %v2179_v8  ;;  %v3062_v27 = vld [vmem:[%s3169_s23 + $0x30] sm:$0xff]  ;;  %v3064_v51 = vld [vmem:[%s3169_s23 + $0x38] sm:$0xff] }
 0x2e4   : > { %3024 = vmatprep.mubr.msk.bf16.mxu1 %vm1334_vm14, %v2517_v1 }
 0x2e6   : > { %v2211_v18 = vpop.permute.xlu1 %2210  ;;  %v2271_v42 = vpop.permute.xlu0 %2270 }
 0x2e7   : > { %v2457_v43 = vsel %vm1208_vm11, %v2425_v6, %v2211_v18  ;;  %v3063_v18 = vld [vmem:[%s3169_s23 + $0x20] sm:$0xff] }
 0x2ea   : > { %v2241_v12 = vpop.permute.xlu1 %2240  ;;  %v2085_v35 = vpop.permute.xlu0 %2084 }
 0x2eb   : > { %v2488_v57 = vsel %vm1241_vm12, %v2457_v43, %v2241_v12  ;;  %v3065_v43 = vld [vmem:[%s3169_s23 + $0x28] sm:$0xff] }
 0x2ec   : > { %v2519_v61 = vsel %vm1274_vm13, %v2488_v57, %v2271_v42 }
 0x2ed   : > { %3025 = vmatmul.mubr.msk.bf16.gmra.mrb[24].mxu1 %vm1334_vm14, %v2519_v61 }
 0x2ee   : > { %v2055_v59 = vpop.permute.xlu1 %2054  ;;  %v2117_v33 = vpop.permute.xlu0 %2116 }
 0x2ef   : > { %v2301_v0 = vsel %vm1043_vm6, %v4183_v5, %v2055_v59 }
 0x2f0   : > { %v2331_v25 = vsel %vm1076_vm7, %v2301_v0, %v2085_v35  ;;  %v3067_v0 = vld [vmem:[%s3169_s23 + $0x40] sm:$0xff] }
 0x2f1   : > { %v2363_v54 = vsel %vm1109_vm8, %v2331_v25, %v2117_v33 }
 0x2f2   : > { %v2057_v63 = vpop.permute.xlu1 %2056  ;;  %v2149_v2 = vpop.permute.xlu0 %2148 }
 0x2f3   : > { %v2303_v9 = vsel %vm1043_vm6, %v4228_v4, %v2057_v63  ;;  %v2395_v5 = vsel %vm1142_vm9, %v2363_v54, %v2149_v2  ;;  %v3066_v63 = vld [vmem:[%s3169_s23 + $0x50] sm:$0xff] }
 0x2f6   : > { %v2087_v14 = vpop.permute.xlu1 %2086  ;;  %v2181_v50 = vpop.permute.xlu0 %2180 }
 0x2f7   : > { %v2333_v20 = vsel %vm1076_vm7, %v2303_v9, %v2087_v14  ;;  %v2427_v4 = vsel %vm1175_vm10, %v2395_v5, %v2181_v50  ;;  %v3070_v5 = vld [vmem:[%s3169_s23 + $0x70] sm:$0xff] }
 0x2fa   : > { %v2119_v39 = vpop.permute.xlu1 %2118  ;;  %v2213_v19 = vpop.permute.xlu0 %2212 }
 0x2fb   : > { %v2365_v15 = vsel %vm1109_vm8, %v2333_v20, %v2119_v39  ;;  %v2459_v29 = vsel %vm1208_vm11, %v2427_v4, %v2213_v19  ;;  %v3069_v20 = vld [vmem:[%s3169_s23 + $0x48] sm:$0xff] }
 0x2fe   : > { %v2151_v7 = vpop.permute.xlu1 %2150  ;;  %v2273_v24 = vpop.permute.xlu0 %2272 }
 0x2ff   : > { %v2397_v30 = vsel %vm1142_vm9, %v2365_v15, %v2151_v7  ;;  %v3068_v7 = vld [vmem:[%s3169_s23 + $0x58] sm:$0xff] }
 0x302   : > { %v2183_v52 = vpop.permute.xlu1 %2182 }
 0x303   : > { %v2429_v26 = vsel %vm1175_vm10, %v2397_v30, %v2183_v52 }
 0x304   : > { %v2460_v37 = vsel %vm1208_vm11, %v2429_v26, %v3740_v36 }
 0x305   : > { %v2491_v38 = vsel %vm1241_vm12, %v2460_v37, %v3754_v58 }
 0x306   : > { %v2243_v32 = vpop.permute.xlu1 %2242  ;;  %v2522_v36 = vsel %vm1274_vm13, %v2491_v38, %v3768_v31 }
 0x307   : > { %v2490_v40 = vsel %vm1241_vm12, %v2459_v29, %v2243_v32  ;;  %v3071_v32 = vld [vmem:[%s3169_s23 + $0x60] sm:$0xff] }
 0x308   : > { %v2521_v34 = vsel %vm1274_vm13, %v2490_v40, %v2273_v24  ;;  %v3072_v40 = vld [vmem:[%s3169_s23 + $0x78] sm:$0xff] }
 0x309   : > { %3028 = vmatprep.mubr.msk.bf16.mxu1 %vm1334_vm14, %v2521_v34 }
 0x30a   : > { %3029 = vmatmul.mubr.msk.bf16.gmra.mrb[28].mxu1 %vm1334_vm14, %v2522_v36  ;;  %v3073_v36 = vld [vmem:[%s3169_s23 + $0x68] sm:$0xff] }
 0x310   : > { %v3002_v58 = vpop.f32.mrb[0].mxu1 }
 0x311   : > { %v2628_v16 = vadd.f32 %v3002_v58, %v4400_v41  ;;  %v2619_v10 = vpop.f32.mrb[1].mxu1 }
 0x312   : > { %v2620_v31 = vadd.f32 %v4400_v41, %v2619_v10  ;;  %v3003_v49 = vpop.f32.mrb[2].mxu1 }
 0x313   : > { %v2748_v46 = vadd.f32 %v3058_v44, %v2628_v16  ;;  %v2631_v62 = vadd.f32 %v3003_v49, %v4400_v41  ;;  %v2622_v47 = vpop.f32.mrb[3].mxu1 }
 0x314   : > { %v2746_v17 = vadd.f32 %v3059_v55, %v2620_v31  ;;  %v2623_v23 = vadd.f32 %v4400_v41, %v2622_v47 }
 0x315   : > { %2780 = vst.msk [vmem:[%s4408_s6 + $0x10] sm:$0xff] %vm1043_vm6, %v2748_v46  ;;  %v2749_v48 = vadd.f32 %v3060_v22, %v2631_v62  ;;  %v3074_v46 = vld [vmem:[%s3169_s23 + $0x90] sm:$0xff] }
 0x316   : > { %2778 = vst.msk [vmem:[%s4408_s6] sm:$0xff] %vm1043_vm6, %v2746_v17  ;;  %v2747_v11 = vadd.f32 %v3061_v53, %v2623_v23  ;;  %v3075_v17 = vld [vmem:[%s3169_s23 + $0x80] sm:$0xff] }
 0x317   : > { %2781 = vst.msk [vmem:[%s4408_s6 + $0x18] sm:$0xff] %vm1043_vm6, %v2749_v48  ;;  %v3076_v48 = vld [vmem:[%s3169_s23 + $0x98] sm:$0xff] }
 0x318   : > { %2779 = vst.msk [vmem:[%s4408_s6 + $0x8] sm:$0xff] %vm1043_vm6, %v2747_v11  ;;  %v3077_v11 = vld [vmem:[%s3169_s23 + $0x88] sm:$0xff] }
 0x330   : > { %v3006_v28 = vpop.f32.mrb[4].mxu1 }
 0x331   : > { %v2644_v56 = vadd.f32 %v3006_v28, %v4400_v41  ;;  %v2635_v3 = vpop.f32.mrb[5].mxu1 }
 0x332   : > { %v2636_v45 = vadd.f32 %v4400_v41, %v2635_v3  ;;  %v3007_v8 = vpop.f32.mrb[6].mxu1 }
 0x333   : > { %v2752_v1 = vadd.f32 %v3062_v27, %v2644_v56  ;;  %v2647_v21 = vadd.f32 %v3007_v8, %v4400_v41  ;;  %v2638_v60 = vpop.f32.mrb[7].mxu1 }
 0x334   : > { %v2750_v42 = vadd.f32 %v3063_v18, %v2636_v45  ;;  %v2639_v13 = vadd.f32 %v4400_v41, %v2638_v60 }
 0x335   : > { %2784 = vst.msk [vmem:[%s4408_s6 + $0x30] sm:$0xff] %vm1043_vm6, %v2752_v1  ;;  %v2753_v6 = vadd.f32 %v3064_v51, %v2647_v21  ;;  %v3078_v1 = vld [vmem:[%s3169_s23 + $0xb0] sm:$0xff] }
 0x336   : > { %2782 = vst.msk [vmem:[%s4408_s6 + $0x20] sm:$0xff] %vm1043_vm6, %v2750_v42  ;;  %v2751_v12 = vadd.f32 %v3065_v43, %v2639_v13  ;;  %v3079_v42 = vld [vmem:[%s3169_s23 + $0xa0] sm:$0xff] }
 0x337   : > { %2785 = vst.msk [vmem:[%s4408_s6 + $0x38] sm:$0xff] %vm1043_vm6, %v2753_v6  ;;  %v3080_v6 = vld [vmem:[%s3169_s23 + $0xb8] sm:$0xff] }
 0x338   : > { %2783 = vst.msk [vmem:[%s4408_s6 + $0x28] sm:$0xff] %vm1043_vm6, %v2751_v12  ;;  %v3081_v12 = vld [vmem:[%s3169_s23 + $0xa8] sm:$0xff] }
 0x350   : > { %v3010_v35 = vpop.f32.mrb[8].mxu1 }
 0x351   : > { %v2660_v57 = vadd.f32 %v3010_v35, %v4400_v41  ;;  %v2651_v61 = vpop.f32.mrb[9].mxu1 }
 0x352   : > { %v2652_v59 = vadd.f32 %v4400_v41, %v2651_v61  ;;  %v3011_v33 = vpop.f32.mrb[10].mxu1 }
 0x353   : > { %v2756_v2 = vadd.f32 %v3066_v63, %v2660_v57  ;;  %v2663_v14 = vadd.f32 %v3011_v33, %v4400_v41  ;;  %v2654_v39 = vpop.f32.mrb[11].mxu1 }
 0x354   : > { %v2754_v50 = vadd.f32 %v3067_v0, %v2652_v59  ;;  %v2655_v25 = vadd.f32 %v4400_v41, %v2654_v39 }
 0x355   : > { %2788 = vst.msk [vmem:[%s4408_s6 + $0x50] sm:$0xff] %vm1043_vm6, %v2756_v2  ;;  %v2757_v9 = vadd.f32 %v3068_v7, %v2663_v14  ;;  %v3082_v2 = vld [vmem:[%s3169_s23 + $0xd0] sm:$0xff] }
 0x356   : > { %2786 = vst.msk [vmem:[%s4408_s6 + $0x40] sm:$0xff] %vm1043_vm6, %v2754_v50  ;;  %v2755_v54 = vadd.f32 %v3069_v20, %v2655_v25  ;;  %v3083_v50 = vld [vmem:[%s3169_s23 + $0xc0] sm:$0xff] }
 0x357   : > { %2789 = vst.msk [vmem:[%s4408_s6 + $0x58] sm:$0xff] %vm1043_vm6, %v2757_v9  ;;  %v3084_v9 = vld [vmem:[%s3169_s23 + $0xd8] sm:$0xff] }
 0x358   : > { %2787 = vst.msk [vmem:[%s4408_s6 + $0x48] sm:$0xff] %vm1043_vm6, %v2755_v54  ;;  %v3085_v54 = vld [vmem:[%s3169_s23 + $0xc8] sm:$0xff] }
 0x370   : > { %v3014_v15 = vpop.f32.mrb[12].mxu1 }
 0x371   : > { %v2676_v19 = vadd.f32 %v3014_v15, %v4400_v41  ;;  %v2667_v30 = vpop.f32.mrb[13].mxu1 }
 0x372   : > { %v2668_v52 = vadd.f32 %v4400_v41, %v2667_v30  ;;  %v3015_v26 = vpop.f32.mrb[14].mxu1 }
 0x373   : > { %v2760_v37 = vadd.f32 %v3070_v5, %v2676_v19  ;;  %v2679_v4 = vadd.f32 %v3015_v26, %v4400_v41  ;;  %v2670_v29 = vpop.f32.mrb[15].mxu1 }
 0x374   : > { %v2758_v38 = vadd.f32 %v3071_v32, %v2668_v52  ;;  %v2671_v24 = vadd.f32 %v4400_v41, %v2670_v29 }
 0x375   : > { %2792 = vst.msk [vmem:[%s4408_s6 + $0x70] sm:$0xff] %vm1043_vm6, %v2760_v37  ;;  %v2761_v34 = vadd.f32 %v3072_v40, %v2679_v4  ;;  %v3086_v37 = vld [vmem:[%s3169_s23 + $0xf0] sm:$0xff] }
 0x376   : > { %2790 = vst.msk [vmem:[%s4408_s6 + $0x60] sm:$0xff] %vm1043_vm6, %v2758_v38  ;;  %v2759_v58 = vadd.f32 %v3073_v36, %v2671_v24  ;;  %v3087_v38 = vld [vmem:[%s3169_s23 + $0xe0] sm:$0xff] }
 0x377   : > { %2793 = vst.msk [vmem:[%s4408_s6 + $0x78] sm:$0xff] %vm1043_vm6, %v2761_v34  ;;  %v3088_v34 = vld [vmem:[%s3169_s23 + $0xf8] sm:$0xff] }
 0x378   : > { %2791 = vst.msk [vmem:[%s4408_s6 + $0x68] sm:$0xff] %vm1043_vm6, %v2759_v58  ;;  %v3089_v58 = vld [vmem:[%s3169_s23 + $0xe8] sm:$0xff] }
 0x385   : > { %v3018_v16 = vpop.f32.mrb[16].mxu1 }
 0x386   : > { %v2692_v10 = vadd.f32 %v3018_v16, %v4400_v41  ;;  %v2683_v31 = vpop.f32.mrb[17].mxu1 }
 0x387   : > { %v2684_v49 = vadd.f32 %v4400_v41, %v2683_v31  ;;  %v3019_v44 = vpop.f32.mrb[18].mxu1 }
 0x388   : > { %v2764_v62 = vadd.f32 %v3074_v46, %v2692_v10  ;;  %v2695_v47 = vadd.f32 %v3019_v44, %v4400_v41  ;;  %v2686_v55 = vpop.f32.mrb[19].mxu1 }
 0x389   : > { %v2762_v23 = vadd.f32 %v3075_v17, %v2684_v49  ;;  %v2687_v22 = vadd.f32 %v4400_v41, %v2686_v55 }
 0x38a   : > { %2796 = vst.msk [vmem:[%s4408_s6 + $0x90] sm:$0xff] %vm1043_vm6, %v2764_v62  ;;  %v2765_v53 = vadd.f32 %v3076_v48, %v2695_v47 }
 0x38b   : > { %2794 = vst.msk [vmem:[%s4408_s6 + $0x80] sm:$0xff] %vm1043_vm6, %v2762_v23  ;;  %v2763_v28 = vadd.f32 %v3077_v11, %v2687_v22 }
 0x38c   : > { %2797 = vst.msk [vmem:[%s4408_s6 + $0x98] sm:$0xff] %vm1043_vm6, %v2765_v53 }
 0x38d   : > { %2795 = vst.msk [vmem:[%s4408_s6 + $0x88] sm:$0xff] %vm1043_vm6, %v2763_v28 }
 0x3a0   : > { %v3022_v56 = vpop.f32.mrb[20].mxu1 }
 0x3a1   : > { %v2708_v3 = vadd.f32 %v3022_v56, %v4400_v41  ;;  %v2699_v45 = vpop.f32.mrb[21].mxu1 }
 0x3a2   : > { %v2700_v8 = vadd.f32 %v4400_v41, %v2699_v45  ;;  %v3023_v27 = vpop.f32.mrb[22].mxu1 }
 0x3a3   : > { %v2768_v21 = vadd.f32 %v3078_v1, %v2708_v3  ;;  %v2711_v60 = vadd.f32 %v3023_v27, %v4400_v41  ;;  %v2702_v18 = vpop.f32.mrb[23].mxu1 }
 0x3a4   : > { %v2766_v13 = vadd.f32 %v3079_v42, %v2700_v8  ;;  %v2703_v51 = vadd.f32 %v4400_v41, %v2702_v18 }
 0x3a5   : > { %2800 = vst.msk [vmem:[%s4408_s6 + $0xb0] sm:$0xff] %vm1043_vm6, %v2768_v21  ;;  %v2769_v43 = vadd.f32 %v3080_v6, %v2711_v60 }
 0x3a6   : > { %2798 = vst.msk [vmem:[%s4408_s6 + $0xa0] sm:$0xff] %vm1043_vm6, %v2766_v13  ;;  %v2767_v35 = vadd.f32 %v3081_v12, %v2703_v51 }
 0x3a7   : > { %2801 = vst.msk [vmem:[%s4408_s6 + $0xb8] sm:$0xff] %vm1043_vm6, %v2769_v43 }
 0x3a8   : > { %2799 = vst.msk [vmem:[%s4408_s6 + $0xa8] sm:$0xff] %vm1043_vm6, %v2767_v35 }
 0x3c0   : > { %v3026_v57 = vpop.f32.mrb[24].mxu1 }
 0x3c1   : > { %v2724_v61 = vadd.f32 %v3026_v57, %v4400_v41  ;;  %v2715_v59 = vpop.f32.mrb[25].mxu1 }
 0x3c2   : > { %v2716_v33 = vadd.f32 %v4400_v41, %v2715_v59  ;;  %v3027_v63 = vpop.f32.mrb[26].mxu1 }
 0x3c3   : > { %v2772_v14 = vadd.f32 %v3082_v2, %v2724_v61  ;;  %v2727_v39 = vadd.f32 %v3027_v63, %v4400_v41  ;;  %v2718_v0 = vpop.f32.mrb[27].mxu1 }
 0x3c4   : > { %v2770_v25 = vadd.f32 %v3083_v50, %v2716_v33  ;;  %v2719_v7 = vadd.f32 %v4400_v41, %v2718_v0 }
 0x3c5   : > { %2804 = vst.msk [vmem:[%s4408_s6 + $0xd0] sm:$0xff] %vm1043_vm6, %v2772_v14  ;;  %v2773_v20 = vadd.f32 %v3084_v9, %v2727_v39 }
 0x3c6   : > { %2802 = vst.msk [vmem:[%s4408_s6 + $0xc0] sm:$0xff] %vm1043_vm6, %v2770_v25  ;;  %v2771_v15 = vadd.f32 %v3085_v54, %v2719_v7 }
 0x3c7   : > { %2805 = vst.msk [vmem:[%s4408_s6 + $0xd8] sm:$0xff] %vm1043_vm6, %v2773_v20 }
 0x3c8   : > { %2803 = vst.msk [vmem:[%s4408_s6 + $0xc8] sm:$0xff] %vm1043_vm6, %v2771_v15 }
 0x3dd   : > { %v3030_v19 = vpop.f32.mrb[28].mxu1 }
 0x3de   : > { %v2740_v30 = vadd.f32 %v3030_v19, %v4400_v41  ;;  %v2731_v52 = vpop.f32.mrb[29].mxu1 }
 0x3df   : > { %v2732_v26 = vadd.f32 %v4400_v41, %v2731_v52  ;;  %v3031_v5 = vpop.f32.mrb[30].mxu1 }
 0x3e0   : > { %v2776_v4 = vadd.f32 %v3086_v37, %v2740_v30  ;;  %v2743_v29 = vadd.f32 %v3031_v5, %v4400_v41  ;;  %v2734_v32 = vpop.f32.mrb[31].mxu1 }
 0x3e1   : > { %v2774_v24 = vadd.f32 %v3087_v38, %v2732_v26  ;;  %v2735_v40 = vadd.f32 %v4400_v41, %v2734_v32 }
 0x3e2   : > { %2808 = vst.msk [vmem:[%s4408_s6 + $0xf0] sm:$0xff] %vm1043_vm6, %v2776_v4  ;;  %v2777_v36 = vadd.f32 %v3088_v34, %v2743_v29 }
 0x3e3   : > { %2806 = vst.msk [vmem:[%s4408_s6 + $0xe0] sm:$0xff] %vm1043_vm6, %v2774_v24  ;;  %v2775_v16 = vadd.f32 %v3089_v58, %v2735_v40 }
 0x3e4   : > { %2809 = vst.msk [vmem:[%s4408_s6 + $0xf8] sm:$0xff] %vm1043_vm6, %v2777_v36 }
 0x3e5   : > { %2807 = vst.msk [vmem:[%s4408_s6 + $0xe8] sm:$0xff] %vm1043_vm6, %v2775_v16 }
 0x3e6 PF: > { %s15_s18 = sadd.s32 1, %s3096_s18  }
 0x3e7   : > { %p12_p4 = scmp.ge.s32.totalorder %s15_s18, 4  }
 0x3e9   :  { %14 = sbr.rel (!%p12_p4) target bundleno = 1 (0x1), region = 70 }

</bundles_post_ra>
